<compile_context>
chip_gen: v7x
topology: tpu7x:2x2x1
jax: 0.10.0
libtpu: 0.0.40
codegen_flags: <defaults>
</compile_context>

<pallas_src>
import functools

import numpy as np
import jax
import jax.numpy as jnp
from jax.experimental import pallas as pl
from jax.experimental.pallas import tpu as pltpu

EMBED_DIM = 32
NUM_HEADS = 4            # only used by the assert in the reference module
WINDOW = 8               # window_size
SEQ_LEN = WINDOW * WINDOW
BATCH = 2
FFN_HIDDEN = 4 * EMBED_DIM
EPS = 1e-5               # PyTorch LayerNorm default eps
NEG_INF = -1e30          # large finite negative (avoids exp(-inf - -inf) NaNs)
SCALE = float(EMBED_DIM) ** (-0.5)
VEC_ROWS = 16            # packed (VEC_ROWS, 128) parameter-vector slab
# Approximate EUP reciprocal: softmax rows sum to 1 +/- ~1e-3 (well inside the
# 2e-2 test tolerance).  Flip to False for an exact divide if tolerances tighten.
APPROX_RECIPROCAL = True

assert WINDOW % NUM_HEADS == 0, "Window size should be divisible by number of heads."
# Batch boundaries must coincide with window boundaries so the fused
# (batch*seq) block-diagonal mask never mixes tokens across batch elements.
assert SEQ_LEN % WINDOW == 0


def _layernorm(x, gamma, beta):
    mu = jnp.mean(x, axis=-1, keepdims=True)
    var = jnp.mean((x - mu) ** 2, axis=-1, keepdims=True)
    return (x - mu) * jax.lax.rsqrt(var + EPS) * gamma + beta


def window_attention_kernel(x_ref, mask_ref, wqkv_ref, w1_ref, w2_ref, vecs_ref,
                            o_ref, *, exp_dtype):
    E = EMBED_DIM
    x = x_ref[...]                                       # (R, E) f32
    xb = x.astype(jnp.bfloat16)

    # --- q/k/v projections ---------------------------------------------------
    # Three (R,E)x(E,E) MXU pushes on a sublane-stacked weight slab; no
    # lane-offset slicing of a fused qkv activation.
    q = jnp.dot(xb, wqkv_ref[0:E, :],
                preferred_element_type=jnp.float32) + vecs_ref[0:1, :E]
    k = jnp.dot(xb, wqkv_ref[E:2 * E, :],
                preferred_element_type=jnp.float32) + vecs_ref[1:2, :E]
    v = jnp.dot(xb, wqkv_ref[2 * E:3 * E, :],
                preferred_element_type=jnp.float32) + vecs_ref[2:3, :E]
    # 1/sqrt(E) applied to the f32 accumulation (not folded into bf16 weights).
    q = q * SCALE

    # --- block-diagonal window attention --------------------------------------
    scores = jax.lax.dot_general(
        q.astype(jnp.bfloat16), k.astype(jnp.bfloat16),
        (((1,), (1,)), ((), ())),
        preferred_element_type=jnp.float32)              # (R, R)
    # Precomputed additive window mask (0 / -1e30): no iota/div/select here.
    scores = scores + mask_ref[...]

    m = jnp.max(scores, axis=-1, keepdims=True)
    # exp in bf16 on chips with a bf16 EUP (v6e/v7x); f32 on v5-class chips.
    p = jnp.exp((scores - m).astype(exp_dtype))
    denom = jnp.sum(p, axis=-1, keepdims=True, dtype=jnp.float32)
    attn = jnp.dot(p.astype(jnp.bfloat16), v.astype(jnp.bfloat16),
                   preferred_element_type=jnp.float32)   # (R, E)
    # Normalize after the PV matmul: (R,E) muls instead of (R,R).
    attn = attn * pl.reciprocal(denom, approx=APPROX_RECIPROCAL)

    # --- residual + norm1 (dropout in eval mode == identity) ------------------
    h = _layernorm(x + attn, vecs_ref[3:4, :E], vecs_ref[4:5, :E])

    # --- FFN (see TODO(synk) above) + residual + norm2 -------------------------
    f = jnp.dot(h.astype(jnp.bfloat16), w1_ref[...],
                preferred_element_type=jnp.float32) + vecs_ref[5:6, :]
    f = jnp.maximum(f, 0.0)
    f = jnp.dot(f.astype(jnp.bfloat16), w2_ref[...],
                preferred_element_type=jnp.float32) + vecs_ref[6:7, :E]
    out = _layernorm(h + f, vecs_ref[7:8, :E], vecs_ref[8:9, :E])

    o_ref[...] = out.astype(o_ref.dtype)


def _softmax_exp_dtype():
    """bf16 exp only where the EUP supports bf16 (v6e/v7x); f32 otherwise."""
    try:
        kind = jax.devices()[0].device_kind.lower()
    except Exception:
        return jnp.float32
    return jnp.bfloat16 if ("v6" in kind or "v7" in kind) else jnp.float32


def _window_mask_bias(rows):
    """Additive block-diagonal window mask: 0 inside a window, -1e30 outside."""
    idx = np.arange(rows)
    same = (idx[:, None] // WINDOW) == (idx[None, :] // WINDOW)
    return jnp.asarray(np.where(same, 0.0, NEG_INF), dtype=jnp.float32)


def _pack_param_vecs(params):
    """Pack all (1,N) parameter vectors into one (VEC_ROWS, 128) f32 slab."""
    rows = [params["bq"], params["bk"], params["bv"],       # rows 0..2
            params["g1"], params["b1"],                     # rows 3,4
            params["bf1"], params["bf2"],                   # rows 5,6
            params["g2"], params["b2"]]                     # rows 7,8
    vecs = jnp.zeros((VEC_ROWS, 128), jnp.float32)
    for i, r in enumerate(rows):
        r = jnp.reshape(r, (-1,)).astype(jnp.float32)
        vecs = vecs.at[i, : r.shape[0]].set(r)
    return vecs


def window_attention_forward(x, params):
    B, S, E = x.shape
    assert E == EMBED_DIM and S % WINDOW == 0
    M = B * S
    x2 = x.reshape(M, E)

    # Tile over 128-row blocks so the score matrix stays (128,128) as batch
    # grows (working set constant; independent blocks marked parallel).
    row_block = min(M, 128)
    assert M % row_block == 0 and row_block % WINDOW == 0
    n_blocks = M // row_block

    wqkv = jnp.concatenate(
        [params["wq_t"], params["wk_t"], params["wv_t"]],
        axis=0).astype(jnp.bfloat16)                        # (3E, E) sublane-stacked
    w1 = params["w1_t"].astype(jnp.bfloat16)                # (E, 4E)
    w2 = params["w2_t"].astype(jnp.bfloat16)                # (4E, E)
    vecs = _pack_param_vecs(params)                         # (16, 128) f32
    mask = _window_mask_bias(row_block)                     # (RB, RB) f32

    kernel = functools.partial(window_attention_kernel,
                               exp_dtype=_softmax_exp_dtype())

    io_spec = pl.BlockSpec((row_block, E), lambda i: (i, 0))

    def fixed(shape):
        return pl.BlockSpec(shape, lambda i: (0, 0))

    out = pl.pallas_call(
        kernel,
        out_shape=jax.ShapeDtypeStruct((M, E), x.dtype),
        grid_spec=pltpu.PrefetchScalarGridSpec(
            num_scalar_prefetch=0,
            grid=(n_blocks,),
            in_specs=[io_spec,
                      fixed((row_block, row_block)),
                      fixed((3 * E, E)),
                      fixed((E, FFN_HIDDEN)),
                      fixed((FFN_HIDDEN, E)),
                      fixed((VEC_ROWS, 128))],
            out_specs=io_spec,
        ),
        compiler_params=pltpu.CompilerParams(
            dimension_semantics=("parallel",)),
    )(x2, mask, wqkv, w1, w2, vecs)
    return out.reshape(B, S, E)


def init_params(key):
    ks = jax.random.split(key, 12)

    def lin_w(k, fan_in, fan_out, scale=0.05):
        # PyTorch Linear stores W as (out, in); we pass W^T so kernel does x @ W^T.
        w = jax.random.normal(k, (fan_out, fan_in), jnp.float32) * scale
        return w.T

    def lin_b(k, fan_out, scale=0.02):
        return jax.random.normal(k, (1, fan_out), jnp.float32) * scale

    return {
        "wq_t": lin_w(ks[0], EMBED_DIM, EMBED_DIM), "bq": lin_b(ks[1], EMBED_DIM),
        "wk_t": lin_w(ks[2], EMBED_DIM, EMBED_DIM), "bk": lin_b(ks[3], EMBED_DIM),
        "wv_t": lin_w(ks[4], EMBED_DIM, EMBED_DIM), "bv": lin_b(ks[5], EMBED_DIM),
        # LayerNorm params: PyTorch default init (ones / zeros)
        "g1": jnp.ones((1, EMBED_DIM), jnp.float32),
        "b1": jnp.zeros((1, EMBED_DIM), jnp.float32),
        "g2": jnp.ones((1, EMBED_DIM), jnp.float32),
        "b2": jnp.zeros((1, EMBED_DIM), jnp.float32),
        # FFN (substitute for undefined self.ffn)
        "w1_t": lin_w(ks[6], EMBED_DIM, FFN_HIDDEN), "bf1": lin_b(ks[7], FFN_HIDDEN),
        "w2_t": lin_w(ks[8], FFN_HIDDEN, EMBED_DIM), "bf2": lin_b(ks[9], EMBED_DIM),
    }


def reference_forward(x, params):
    """Pure-JAX f32 reference mirroring the PyTorch forward (eval mode)."""
    B, S, E = x.shape
    W = WINDOW
    q = x @ params["wq_t"] + params["bq"]
    k = x @ params["wk_t"] + params["bk"]
    v = x @ params["wv_t"] + params["bv"]
    q4 = q.reshape(-1, W, W, E)
    k4 = k.reshape(-1, W, W, E)
    v4 = v.reshape(-1, W, W, E)
    scores = jnp.einsum("gwqe,gwke->gwqk", q4, k4) * SCALE
    p = jax.nn.softmax(scores, axis=-1)
    attn = jnp.einsum("gwqk,gwke->gwqe", p, v4).reshape(B, S, E)
    h = _layernorm(x + attn, params["g1"], params["b1"])
    f = jnp.maximum(h @ params["w1_t"] + params["bf1"], 0.0)
    f = f @ params["w2_t"] + params["bf2"]
    return _layernorm(h + f, params["g2"], params["b2"])


if __name__ == "__main__":
    key = jax.random.PRNGKey(0)
    kx, kp = jax.random.split(key)
    x = jax.random.normal(kx, (BATCH, SEQ_LEN, EMBED_DIM), jnp.float32)
    params = init_params(kp)

    out = window_attention_forward(x, params)
    out = jax.block_until_ready(out)

    assert out.shape == (BATCH, SEQ_LEN, EMBED_DIM)
    ref = reference_forward(x, params)
    # bf16 MXU operands / bf16 exp (f32 accumulation) vs. pure-f32 reference.
    if not np.allclose(np.asarray(out), np.asarray(ref), atol=2e-2, rtol=2e-2):
        raise AssertionError("Pallas kernel output does not match JAX reference")

    print("KERNEL_OK")
</pallas_src>

<mosaic_0001>
module attributes {stable_mosaic.version = 11 : i64} {
  func.func @window_attention_kernel(%arg0: i32, %arg1: memref<128x32xf32, #tpu.memory_space<vmem>>, %arg2: memref<128x128xf32, #tpu.memory_space<vmem>>, %arg3: memref<96x32xbf16, #tpu.memory_space<vmem>>, %arg4: memref<32x128xbf16, #tpu.memory_space<vmem>>, %arg5: memref<128x32xbf16, #tpu.memory_space<vmem>>, %arg6: memref<16x128xf32, #tpu.memory_space<vmem>>, %arg7: memref<128x32xf32, #tpu.memory_space<vmem>>) attributes {dimension_semantics = [#tpu.dimension_semantics<parallel>], iteration_bounds = array<i64: 1>, scalar_prefetch = 0 : i64, scratch_operands = 0 : i64, tpu.core_type = #tpu.core_type<tc>, window_params = [{transform_indices = @transform_0, window_bounds = array<i64: 128, 32>}, {pipeline_mode = #tpu.pipeline_mode<synchronous>, transform_indices = @transform_1, window_bounds = array<i64: 128, 128>}, {pipeline_mode = #tpu.pipeline_mode<synchronous>, transform_indices = @transform_2, window_bounds = array<i64: 96, 32>}, {pipeline_mode = #tpu.pipeline_mode<synchronous>, transform_indices = @transform_3, window_bounds = array<i64: 32, 128>}, {pipeline_mode = #tpu.pipeline_mode<synchronous>, transform_indices = @transform_4, window_bounds = array<i64: 128, 32>}, {pipeline_mode = #tpu.pipeline_mode<synchronous>, transform_indices = @transform_5, window_bounds = array<i64: 16, 128>}, {transform_indices = @transform_6, window_bounds = array<i64: 128, 32>}]} {
    %c0 = arith.constant 0 : index
    %c0_0 = arith.constant 0 : index
    %0 = vector.load %arg1[%c0, %c0_0] : memref<128x32xf32, #tpu.memory_space<vmem>>, vector<128x32xf32>
    %1 = arith.truncf %0 : vector<128x32xf32> to vector<128x32xbf16>
    %c0_1 = arith.constant 0 : index
    %c0_2 = arith.constant 0 : index
    %2 = vector.load %arg3[%c0_1, %c0_2] : memref<96x32xbf16, #tpu.memory_space<vmem>>, vector<32x32xbf16>
    %cst = arith.constant dense<0.000000e+00> : vector<128x32xf32>
    %3 = tpu.matmul %1, %2, %cst {dimension_numbers = #tpu.dot_dimension_numbers<[1], [0], [0], [1], [0, 0, 1, 1], [], []>} : vector<128x32xbf16>, vector<32x32xbf16>, vector<128x32xf32> -> vector<128x32xf32>
    %c0_3 = arith.constant 0 : index
    %c0_4 = arith.constant 0 : index
    %4 = vector.load %arg6[%c0_3, %c0_4] : memref<16x128xf32, #tpu.memory_space<vmem>>, vector<1x32xf32>
    %5 = vector.broadcast %4 : vector<1x32xf32> to vector<128x32xf32>
    %6 = arith.addf %3, %5 : vector<128x32xf32>
    %c32 = arith.constant 32 : index
    %c0_5 = arith.constant 0 : index
    %7 = vector.load %arg3[%c32, %c0_5] : memref<96x32xbf16, #tpu.memory_space<vmem>>, vector<32x32xbf16>
    %cst_6 = arith.constant dense<0.000000e+00> : vector<128x32xf32>
    %8 = tpu.matmul %1, %7, %cst_6 {dimension_numbers = #tpu.dot_dimension_numbers<[1], [0], [0], [1], [0, 0, 1, 1], [], []>} : vector<128x32xbf16>, vector<32x32xbf16>, vector<128x32xf32> -> vector<128x32xf32>
    %c1 = arith.constant 1 : index
    %c0_7 = arith.constant 0 : index
    %9 = vector.load %arg6[%c1, %c0_7] : memref<16x128xf32, #tpu.memory_space<vmem>>, vector<1x32xf32>
    %10 = vector.broadcast %9 : vector<1x32xf32> to vector<128x32xf32>
    %11 = arith.addf %8, %10 : vector<128x32xf32>
    %c64 = arith.constant 64 : index
    %c0_8 = arith.constant 0 : index
    %12 = vector.load %arg3[%c64, %c0_8] : memref<96x32xbf16, #tpu.memory_space<vmem>>, vector<32x32xbf16>
    %cst_9 = arith.constant dense<0.000000e+00> : vector<128x32xf32>
    %13 = tpu.matmul %1, %12, %cst_9 {dimension_numbers = #tpu.dot_dimension_numbers<[1], [0], [0], [1], [0, 0, 1, 1], [], []>} : vector<128x32xbf16>, vector<32x32xbf16>, vector<128x32xf32> -> vector<128x32xf32>
    %c2 = arith.constant 2 : index
    %c0_10 = arith.constant 0 : index
    %14 = vector.load %arg6[%c2, %c0_10] : memref<16x128xf32, #tpu.memory_space<vmem>>, vector<1x32xf32>
    %15 = vector.broadcast %14 : vector<1x32xf32> to vector<128x32xf32>
    %16 = arith.addf %13, %15 : vector<128x32xf32>
    %cst_11 = arith.constant 0.176776692 : f32
    %17 = vector.broadcast %cst_11 : f32 to vector<128x32xf32>
    %18 = arith.mulf %6, %17 : vector<128x32xf32>
    %19 = arith.truncf %18 : vector<128x32xf32> to vector<128x32xbf16>
    %20 = arith.truncf %11 : vector<128x32xf32> to vector<128x32xbf16>
    %cst_12 = arith.constant dense<0.000000e+00> : vector<128x128xf32>
    %21 = tpu.matmul %19, %20, %cst_12 {dimension_numbers = #tpu.dot_dimension_numbers<[1], [1], [0], [0], [0, 0, 1, 0], [], []>} : vector<128x32xbf16>, vector<128x32xbf16>, vector<128x128xf32> -> vector<128x128xf32>
    %c0_13 = arith.constant 0 : index
    %c0_14 = arith.constant 0 : index
    %22 = vector.load %arg2[%c0_13, %c0_14] : memref<128x128xf32, #tpu.memory_space<vmem>>, vector<128x128xf32>
    %23 = arith.addf %21, %22 : vector<128x128xf32>
    %cst_15 = arith.constant dense<0xFF800000> : vector<128xf32>
    %24 = vector.multi_reduction <maximumf>, %23, %cst_15 [1] : vector<128x128xf32> to vector<128xf32>
    %25 = vector.shape_cast %24 : vector<128xf32> to vector<128x1xf32>
    %26 = vector.broadcast %25 : vector<128x1xf32> to vector<128x128xf32>
    %27 = arith.subf %23, %26 : vector<128x128xf32>
    %28 = math.exp %27 : vector<128x128xf32>
    %cst_16 = arith.constant dense<0.000000e+00> : vector<128xf32>
    %29 = vector.multi_reduction <add>, %28, %cst_16 [1] : vector<128x128xf32> to vector<128xf32>
    %30 = vector.shape_cast %29 : vector<128xf32> to vector<128x1xf32>
    %31 = arith.truncf %28 : vector<128x128xf32> to vector<128x128xbf16>
    %32 = arith.truncf %16 : vector<128x32xf32> to vector<128x32xbf16>
    %cst_17 = arith.constant dense<0.000000e+00> : vector<128x32xf32>
    %33 = tpu.matmul %31, %32, %cst_17 {dimension_numbers = #tpu.dot_dimension_numbers<[1], [0], [0], [1], [0, 0, 1, 1], [], []>} : vector<128x128xbf16>, vector<128x32xbf16>, vector<128x32xf32> -> vector<128x32xf32>
    %34 = tpu.reciprocal %30 {approx = true} : vector<128x1xf32> -> vector<128x1xf32>
    %35 = vector.broadcast %34 : vector<128x1xf32> to vector<128x32xf32>
    %36 = arith.mulf %33, %35 : vector<128x32xf32>
    %37 = arith.addf %0, %36 : vector<128x32xf32>
    %c3 = arith.constant 3 : index
    %c0_18 = arith.constant 0 : index
    %38 = vector.load %arg6[%c3, %c0_18] : memref<16x128xf32, #tpu.memory_space<vmem>>, vector<1x32xf32>
    %c4 = arith.constant 4 : index
    %c0_19 = arith.constant 0 : index
    %39 = vector.load %arg6[%c4, %c0_19] : memref<16x128xf32, #tpu.memory_space<vmem>>, vector<1x32xf32>
    %cst_20 = arith.constant dense<0.000000e+00> : vector<128xf32>
    %40 = vector.multi_reduction <add>, %37, %cst_20 [1] : vector<128x32xf32> to vector<128xf32>
    %41 = vector.shape_cast %40 : vector<128xf32> to vector<128x1xf32>
    %cst_21 = arith.constant 3.200000e+01 : f32
    %42 = vector.broadcast %cst_21 : f32 to vector<128x1xf32>
    %43 = arith.divf %41, %42 : vector<128x1xf32>
    %44 = vector.broadcast %43 : vector<128x1xf32> to vector<128x32xf32>
    %45 = arith.subf %37, %44 : vector<128x32xf32>
    %46 = arith.mulf %45, %45 : vector<128x32xf32>
    %cst_22 = arith.constant dense<0.000000e+00> : vector<128xf32>
    %47 = vector.multi_reduction <add>, %46, %cst_22 [1] : vector<128x32xf32> to vector<128xf32>
    %48 = vector.shape_cast %47 : vector<128xf32> to vector<128x1xf32>
    %cst_23 = arith.constant 3.200000e+01 : f32
    %49 = vector.broadcast %cst_23 : f32 to vector<128x1xf32>
    %50 = arith.divf %48, %49 : vector<128x1xf32>
    %51 = vector.broadcast %43 : vector<128x1xf32> to vector<128x32xf32>
    %52 = arith.subf %37, %51 : vector<128x32xf32>
    %cst_24 = arith.constant 9.99999974E-6 : f32
    %53 = vector.broadcast %cst_24 : f32 to vector<128x1xf32>
    %54 = arith.addf %50, %53 : vector<128x1xf32>
    %55 = math.rsqrt %54 : vector<128x1xf32>
    %56 = vector.broadcast %55 : vector<128x1xf32> to vector<128x32xf32>
    %57 = arith.mulf %52, %56 : vector<128x32xf32>
    %58 = vector.broadcast %38 : vector<1x32xf32> to vector<128x32xf32>
    %59 = arith.mulf %57, %58 : vector<128x32xf32>
    %60 = vector.broadcast %39 : vector<1x32xf32> to vector<128x32xf32>
    %61 = arith.addf %59, %60 : vector<128x32xf32>
    %62 = arith.truncf %61 : vector<128x32xf32> to vector<128x32xbf16>
    %c0_25 = arith.constant 0 : index
    %c0_26 = arith.constant 0 : index
    %63 = vector.load %arg4[%c0_25, %c0_26] : memref<32x128xbf16, #tpu.memory_space<vmem>>, vector<32x128xbf16>
    %cst_27 = arith.constant dense<0.000000e+00> : vector<128x128xf32>
    %64 = tpu.matmul %62, %63, %cst_27 {dimension_numbers = #tpu.dot_dimension_numbers<[1], [0], [0], [1], [0, 0, 1, 1], [], []>} : vector<128x32xbf16>, vector<32x128xbf16>, vector<128x128xf32> -> vector<128x128xf32>
    %c5 = arith.constant 5 : index
    %c0_28 = arith.constant 0 : index
    %65 = vector.load %arg6[%c5, %c0_28] : memref<16x128xf32, #tpu.memory_space<vmem>>, vector<1x128xf32>
    %66 = vector.broadcast %65 : vector<1x128xf32> to vector<128x128xf32>
    %67 = arith.addf %64, %66 : vector<128x128xf32>
    %cst_29 = arith.constant 0.000000e+00 : f32
    %68 = vector.broadcast %cst_29 : f32 to vector<128x128xf32>
    %69 = arith.maximumf %67, %68 : vector<128x128xf32>
    %70 = arith.truncf %69 : vector<128x128xf32> to vector<128x128xbf16>
    %c0_30 = arith.constant 0 : index
    %c0_31 = arith.constant 0 : index
    %71 = vector.load %arg5[%c0_30, %c0_31] : memref<128x32xbf16, #tpu.memory_space<vmem>>, vector<128x32xbf16>
    %cst_32 = arith.constant dense<0.000000e+00> : vector<128x32xf32>
    %72 = tpu.matmul %70, %71, %cst_32 {dimension_numbers = #tpu.dot_dimension_numbers<[1], [0], [0], [1], [0, 0, 1, 1], [], []>} : vector<128x128xbf16>, vector<128x32xbf16>, vector<128x32xf32> -> vector<128x32xf32>
    %c6 = arith.constant 6 : index
    %c0_33 = arith.constant 0 : index
    %73 = vector.load %arg6[%c6, %c0_33] : memref<16x128xf32, #tpu.memory_space<vmem>>, vector<1x32xf32>
    %74 = vector.broadcast %73 : vector<1x32xf32> to vector<128x32xf32>
    %75 = arith.addf %72, %74 : vector<128x32xf32>
    %76 = arith.addf %61, %75 : vector<128x32xf32>
    %c7 = arith.constant 7 : index
    %c0_34 = arith.constant 0 : index
    %77 = vector.load %arg6[%c7, %c0_34] : memref<16x128xf32, #tpu.memory_space<vmem>>, vector<1x32xf32>
    %c8 = arith.constant 8 : index
    %c0_35 = arith.constant 0 : index
    %78 = vector.load %arg6[%c8, %c0_35] : memref<16x128xf32, #tpu.memory_space<vmem>>, vector<1x32xf32>
    %cst_36 = arith.constant dense<0.000000e+00> : vector<128xf32>
    %79 = vector.multi_reduction <add>, %76, %cst_36 [1] : vector<128x32xf32> to vector<128xf32>
    %80 = vector.shape_cast %79 : vector<128xf32> to vector<128x1xf32>
    %cst_37 = arith.constant 3.200000e+01 : f32
    %81 = vector.broadcast %cst_37 : f32 to vector<128x1xf32>
    %82 = arith.divf %80, %81 : vector<128x1xf32>
    %83 = vector.broadcast %82 : vector<128x1xf32> to vector<128x32xf32>
    %84 = arith.subf %76, %83 : vector<128x32xf32>
    %85 = arith.mulf %84, %84 : vector<128x32xf32>
    %cst_38 = arith.constant dense<0.000000e+00> : vector<128xf32>
    %86 = vector.multi_reduction <add>, %85, %cst_38 [1] : vector<128x32xf32> to vector<128xf32>
    %87 = vector.shape_cast %86 : vector<128xf32> to vector<128x1xf32>
    %cst_39 = arith.constant 3.200000e+01 : f32
    %88 = vector.broadcast %cst_39 : f32 to vector<128x1xf32>
    %89 = arith.divf %87, %88 : vector<128x1xf32>
    %90 = vector.broadcast %82 : vector<128x1xf32> to vector<128x32xf32>
    %91 = arith.subf %76, %90 : vector<128x32xf32>
    %cst_40 = arith.constant 9.99999974E-6 : f32
    %92 = vector.broadcast %cst_40 : f32 to vector<128x1xf32>
    %93 = arith.addf %89, %92 : vector<128x1xf32>
    %94 = math.rsqrt %93 : vector<128x1xf32>
    %95 = vector.broadcast %94 : vector<128x1xf32> to vector<128x32xf32>
    %96 = arith.mulf %91, %95 : vector<128x32xf32>
    %97 = vector.broadcast %77 : vector<1x32xf32> to vector<128x32xf32>
    %98 = arith.mulf %96, %97 : vector<128x32xf32>
    %99 = vector.broadcast %78 : vector<1x32xf32> to vector<128x32xf32>
    %100 = arith.addf %98, %99 : vector<128x32xf32>
    %c0_41 = arith.constant 0 : index
    %c0_42 = arith.constant 0 : index
    %101 = vector.load %arg7[%c0_41, %c0_42] : memref<128x32xf32, #tpu.memory_space<vmem>>, vector<128x32xf32>
    tpu.vector_store %arg7[%c0_41, %c0_42], %100 {strides = array<i32>} : memref<128x32xf32, #tpu.memory_space<vmem>>, vector<128x32xf32>,
    return
  }
  func.func @transform_0(%arg0: i32) -> (i32, i32) {
    %c0_i32 = arith.constant 0 : i32
    %c0_i32_0 = arith.constant 0 : i32
    return %arg0, %c0_i32 : i32, i32
  }
  func.func @transform_1(%arg0: i32) -> (i32, i32) {
    %c0_i32 = arith.constant 0 : i32
    %c0_i32_0 = arith.constant 0 : i32
    %c0_i32_1 = arith.constant 0 : i32
    return %c0_i32, %c0_i32_0 : i32, i32
  }
  func.func @transform_2(%arg0: i32) -> (i32, i32) {
    %c0_i32 = arith.constant 0 : i32
    %c0_i32_0 = arith.constant 0 : i32
    %c0_i32_1 = arith.constant 0 : i32
    return %c0_i32, %c0_i32_0 : i32, i32
  }
  func.func @transform_3(%arg0: i32) -> (i32, i32) {
    %c0_i32 = arith.constant 0 : i32
    %c0_i32_0 = arith.constant 0 : i32
    %c0_i32_1 = arith.constant 0 : i32
    return %c0_i32, %c0_i32_0 : i32, i32
  }
  func.func @transform_4(%arg0: i32) -> (i32, i32) {
    %c0_i32 = arith.constant 0 : i32
    %c0_i32_0 = arith.constant 0 : i32
    %c0_i32_1 = arith.constant 0 : i32
    return %c0_i32, %c0_i32_0 : i32, i32
  }
  func.func @transform_5(%arg0: i32) -> (i32, i32) {
    %c0_i32 = arith.constant 0 : i32
    %c0_i32_0 = arith.constant 0 : i32
    %c0_i32_1 = arith.constant 0 : i32
    return %c0_i32, %c0_i32_0 : i32, i32
  }
  func.func @transform_6(%arg0: i32) -> (i32, i32) {
    %c0_i32 = arith.constant 0 : i32
    %c0_i32_0 = arith.constant 0 : i32
    return %arg0, %c0_i32 : i32, i32
  }
}

</mosaic_0001>

<bundles_post_ra>
// kernel: tpu_custom_call.1
= control target key start
LH: loop header
LB: loop body
LE: loop exit
PB: predicated region body
PF: predicated region fallthrough
CT: control target
= control target key end

     0   :  { %vm69_vm0 = vcmask 261120   ;;  %s3283_s2 = inlined_call_operand.vmem [shape: bf16[96,32], index: 2, kind: input, shape index: {}]   ;;  %s3284_s0 = inlined_call_operand.vmem [shape: f32[128,32], index: 0, kind: input, shape index: {}]   ;;  %s3285_s5 = inlined_call_operand.vmem [shape: f32[16,128], index: 5, kind: input, shape index: {}]   ;;  %s3286_s1 = inlined_call_operand.vmem [shape: f32[128,128], index: 1, kind: input, shape index: {}]   ;;  %s3287_s3 = inlined_call_operand.vmem [shape: bf16[32,128], index: 3, kind: input, shape index: {}]   ;;  %s3288_s4 = inlined_call_operand.vmem [shape: bf16[128,32], index: 4, kind: input, shape index: {}]   ;;  %s3289_s6 = inlined_call_operand.vmem [shape: f32[128,32], index: 6, kind: output, shape index: {}]  }
   0x1   :  { %v2107_v0 = vld [vmem:[%s3283_s2 + $0x10] sm:$0xff]   ;;  %v2108_v1 = vld [vmem:[%s3283_s2 + $0x18] sm:$0xff]   ;;  %v2295_v2 = vld [vmem:[%s3284_s0] sm:$0xff] }
   0x2   :  { %1943 = vmatprep.subr.bf16.mxu1 %v2107_v0  ;;  %v2300_v3 = vld [vmem:[%s3284_s0 + $0x8] sm:$0xff]  ;;  %v2307_v5 = vld [vmem:[%s3284_s0 + $0x10] sm:$0xff]  ;;  %v2312_v6 = vld [vmem:[%s3284_s0 + $0x18] sm:$0xff] }
   0x3   :  { %1944 = vmatpush3.bf16.msra.mxu1 %v2107_v0  ;;  %v40_v4 = vpack.c.bf16 %v2300_v3, %v2295_v2  ;;  %v2317_v7 = vld [vmem:[%s3284_s0 + $0x20] sm:$0xff]  ;;  %v2322_v8 = vld [vmem:[%s3284_s0 + $0x28] sm:$0xff]  ;;  %v41_v9 = vpack.c.bf16 %v2312_v6, %v2307_v5  ;;  %v2341_v13 = vld [vmem:[%s3284_s0 + $0x30] sm:$0xff] }
   0x4   :  { %1945 = vmatprep.subr.bf16.mxu1 %v2108_v1  ;;  %v42_v10 = vpack.c.bf16 %v2322_v8, %v2317_v7  ;;  %v2109_v11 = vld [vmem:[%s3283_s2] sm:$0xff]   ;;  %v2110_v12 = vld [vmem:[%s3283_s2 + $0x8] sm:$0xff]   ;;  %v2346_v14 = vld [vmem:[%s3284_s0 + $0x38] sm:$0xff] }
   0x5   :  { %1947 = vmatprep.mubr.msk.bf16.mxu1 %vm69_vm0, %v40_v4  ;;  %1927 = vmatprep.mubr.msk.bf16.mxu0 %vm69_vm0, %v40_v4  ;;  %v2351_v15 = vld [vmem:[%s3284_s0 + $0x40] sm:$0xff]  ;;  %v2356_v16 = vld [vmem:[%s3284_s0 + $0x48] sm:$0xff]  ;;  %v43_v17 = vpack.c.bf16 %v2346_v14, %v2341_v13  ;;  %v2368_v19 = vld [vmem:[%s3284_s0 + $0x50] sm:$0xff] }
   0x6   :  { %1923 = vmatprep.subr.bf16.mxu0 %v2109_v11  ;;  %v44_v18 = vpack.c.bf16 %v2356_v16, %v2351_v15  ;;  %v2373_v20 = vld [vmem:[%s3284_s0 + $0x58] sm:$0xff]  ;;  %v2379_v21 = vld [vmem:[%s3284_s0 + $0x60] sm:$0xff]  ;;  %v2384_v22 = vld [vmem:[%s3284_s0 + $0x68] sm:$0xff] }
   0x7   :  { %1946 = vmatpush3.bf16.msra.mxu1 %v2108_v1  ;;  %1924 = vmatpush3.bf16.msra.mxu0 %v2109_v11  ;;  %v45_v23 = vpack.c.bf16 %v2373_v20, %v2368_v19  ;;  %v46_v24 = vpack.c.bf16 %v2384_v22, %v2379_v21  ;;  %v2396_v25 = vld [vmem:[%s3284_s0 + $0x70] sm:$0xff]  ;;  %v2401_v26 = vld [vmem:[%s3284_s0 + $0x78] sm:$0xff]  ;;  %v2111_v28 = vld [vmem:[%s3283_s2 + $0x20] sm:$0xff]  }
   0x8   :  { %1925 = vmatprep.subr.bf16.mxu0 %v2110_v12  ;;  %v47_v27 = vpack.c.bf16 %v2401_v26, %v2396_v25  ;;  %v2112_v29 = vld [vmem:[%s3283_s2 + $0x28] sm:$0xff]   ;;  %v2426_v31 = vld [vmem:[%s3285_s5 + $0x1] ss:$0 sm:$0xff]  ;;  %v2436_v41 = vld [vmem:[%s3285_s5] ss:$0 sm:$0xff] }
   0xa   :  { %1948 = vmatmul.mubr.msk.bf16.vlgmr.msra.gmra.mrb[0].mxu1 %vm69_vm0, %v41_v9 }
   0xb   :  { %1951 = vmatprep.mubr.msk.bf16.mxu1 %vm69_vm0, %v42_v10  ;;  %1926 = vmatpush3.bf16.msra.mxu0 %v2110_v12 }
   0xc   :  { %1963 = vmatprep.subr.bf16.mxu0 %v2111_v28 }
   0xe   :  { %1928 = vmatmul.mubr.msk.bf16.vlgmr.msra.gmra.mrb[0].mxu0 %vm69_vm0, %v41_v9 }
   0xf   :  { %1931 = vmatprep.mubr.msk.bf16.mxu0 %vm69_vm0, %v42_v10  ;;  %1964 = vmatpush3.bf16.msra.mxu0 %v2111_v28 }
  0x10   :  { %1965 = vmatprep.subr.bf16.mxu0 %v2112_v29 }
  0x12   :  { %1952 = vmatmul.mubr.msk.bf16.gmra.mrb[4].mxu1 %vm69_vm0, %v43_v17 }
  0x13   :  { %1955 = vmatprep.mubr.msk.bf16.mxu1 %vm69_vm0, %v44_v18  ;;  %1966 = vmatpush3.bf16.msra.mxu0 %v2112_v29 }
  0x16   :  { %1932 = vmatmul.mubr.msk.bf16.gmra.mrb[4].mxu0 %vm69_vm0, %v43_v17 }
  0x17   :  { %1935 = vmatprep.mubr.msk.bf16.mxu0 %vm69_vm0, %v44_v18 }
  0x1a   :  { %1956 = vmatmul.mubr.msk.bf16.gmra.mrb[8].mxu1 %vm69_vm0, %v45_v23 }
  0x1b   :  { %1959 = vmatprep.mubr.msk.bf16.mxu1 %vm69_vm0, %v46_v24 }
  0x1e   :  { %1936 = vmatmul.mubr.msk.bf16.gmra.mrb[8].mxu0 %vm69_vm0, %v45_v23 }
  0x1f   :  { %1939 = vmatprep.mubr.msk.bf16.mxu0 %vm69_vm0, %v46_v24 }
  0x22   :  { %1960 = vmatmul.mubr.msk.bf16.gmra.mrb[12].mxu1 %vm69_vm0, %v47_v27 }
  0x26   :  { %1940 = vmatmul.mubr.msk.bf16.gmra.mrb[12].mxu0 %vm69_vm0, %v47_v27 }
  0x27   :  { %1967 = vmatprep.mubr.msk.bf16.mxu0 %vm69_vm0, %v40_v4 }
  0x2e   :  { %1968 = vmatmul.mubr.msk.bf16.vlgmr.msra.gmra.mrb[16].mxu0 %vm69_vm0, %v41_v9 }
  0x2f   :  { %1971 = vmatprep.mubr.msk.bf16.mxu0 %vm69_vm0, %v42_v10 }
  0x36   :  { %1972 = vmatmul.mubr.msk.bf16.gmra.mrb[20].mxu0 %vm69_vm0, %v43_v17 }
  0x37   :  { %1975 = vmatprep.mubr.msk.bf16.mxu0 %vm69_vm0, %v44_v18 }
  0x3e   :  { %1976 = vmatmul.mubr.msk.bf16.gmra.mrb[24].mxu0 %vm69_vm0, %v45_v23 }
  0x3f   :  { %1979 = vmatprep.mubr.msk.bf16.mxu0 %vm69_vm0, %v46_v24 }
  0x46   :  { %1980 = vmatmul.mubr.msk.bf16.gmra.mrb[28].mxu0 %vm69_vm0, %v47_v27 }
  0xdd   :  { %v1949_v30 = vpop.f32.mrb[0].mxu1 }
  0xde   :  { %v246_v32 = vpop.f32.mrb[1].mxu1  ;;  %v255_v34 = vadd.f32 %v1949_v30, %v2426_v31 }
  0xdf   :  { %v1950_v33 = vpop.f32.mrb[2].mxu1  ;;  %v247_v37 = vadd.f32 %v2426_v31, %v246_v32 }
  0xe0   :  { %v258_v35 = vadd.f32 %v1950_v33, %v2426_v31  ;;  %v249_v36 = vpop.f32.mrb[3].mxu1 }
  0xe1   :  { %v250_v38 = vadd.f32 %v2426_v31, %v249_v36  ;;  %v1929_v44 = vpop.f32.mrb[0].mxu0 }
  0xe2   :  { %v452_v39 = vpack.c.bf16 %v258_v35, %v255_v34  ;;  %v137_v47 = vadd.f32 %v1929_v44, %v2436_v41  ;;  %v128_v48 = vpop.f32.mrb[1].mxu0 }
  0xe3   :  { %v451_v40 = vpack.c.bf16 %v250_v38, %v247_v37  ;;  %v129_v51 = vadd.f32 %v2436_v41, %v128_v48  ;;  %v1930_v52 = vpop.f32.mrb[2].mxu0 }
  0xe4   :  { %v2446_v55 = vmul.f32 0.17677669, %v137_v47  ;;  %v140_v56 = vadd.f32 %v1930_v52, %v2436_v41  ;;  %v131_v57 = vpop.f32.mrb[3].mxu0  ;;  %v503_v4 = vsel %vm69_vm0, %v452_v39, 0 }
  0xe5   :  { %2099 = vmatprep.subr.msk.bf16.mxu1 %vm69_vm0, %v451_v40  ;;  %v500_v42 = vsel %vm69_vm0, %v451_v40, 0  ;;  %v1953_v43 = vpop.f32.mrb[4].mxu1  ;;  %v427_v59 = vmul.f32 0.17677669, %v129_v51  ;;  %v132_v60 = vadd.f32 %v2436_v41, %v131_v57 }
  0xe6   :  { %1984 = vmatpush3.bf16.xpose.msra.mxu1 %v500_v42  ;;  %v271_v45 = vadd.f32 %v1953_v43, %v2426_v31  ;;  %v262_v46 = vpop.f32.mrb[5].mxu1  ;;  %v2451_v62 = vmul.f32 0.17677669, %v140_v56 }
  0xe7   :  { %2100 = vmatprep.subr.msk.bf16.mxu1 %vm69_vm0, %v452_v39  ;;  %v263_v49 = vadd.f32 %v2426_v31, %v262_v46  ;;  %v1954_v50 = vpop.f32.mrb[6].mxu1  ;;  %v428_v0 = vmul.f32 0.17677669, %v132_v60 }
  0xe8   :  { %v274_v53 = vadd.f32 %v1954_v50, %v2426_v31  ;;  %v265_v54 = vpop.f32.mrb[7].mxu1  ;;  %v444_v1 = vpack.c.bf16 %v2451_v62, %v2446_v55 }
  0xe9   :  { %v266_v58 = vadd.f32 %v2426_v31, %v265_v54  ;;  %v443_v10 = vpack.c.bf16 %v428_v0, %v427_v59  ;;  %v1933_v11 = vpop.f32.mrb[4].mxu0 }
  0xea   :  { %v454_v61 = vpack.c.bf16 %v274_v53, %v271_v45  ;;  %v153_v18 = vadd.f32 %v1933_v11, %v2436_v41  ;;  %v144_v23 = vpop.f32.mrb[5].mxu0 }
  0xeb   :  { %v453_v63 = vpack.c.bf16 %v266_v58, %v263_v49  ;;  %v145_v28 = vadd.f32 %v2436_v41, %v144_v23  ;;  %v1934_v29 = vpop.f32.mrb[6].mxu0  ;;  %1999 = vmatprep.mubr.msk.bf16.mxu1 %vm69_vm0, %v443_v10 }
  0xec   :  { %v2463_v33 = vmul.f32 0.17677669, %v153_v18  ;;  %v156_v34 = vadd.f32 %v1934_v29, %v2436_v41  ;;  %v147_v35 = vpop.f32.mrb[7].mxu0 }
  0xed   :  { %v1957_v9 = vpop.f32.mrb[8].mxu1  ;;  %v2467_v37 = vmul.f32 0.17677669, %v145_v28  ;;  %v148_v38 = vadd.f32 %v2436_v41, %v147_v35  ;;  %v506_v45 = vsel %vm69_vm0, %v453_v63, 0 }
  0xee   :  { %1986 = vmatpush3.bf16.xpose.msra.mxu1 %v503_v4  ;;  %v287_v12 = vadd.f32 %v1957_v9, %v2426_v31  ;;  %v278_v17 = vpop.f32.mrb[9].mxu1  ;;  %v2470_v40 = vmul.f32 0.17677669, %v156_v34 }
  0xef   :  { %2101 = vmatprep.subr.msk.bf16.mxu1 %vm69_vm0, %v453_v63  ;;  %v279_v24 = vadd.f32 %v2426_v31, %v278_v17  ;;  %v1958_v27 = vpop.f32.mrb[10].mxu1  ;;  %v432_v43 = vmul.f32 0.17677669, %v148_v38 }
  0xf0   :  { %v290_v30 = vadd.f32 %v1958_v27, %v2426_v31  ;;  %v281_v32 = vpop.f32.mrb[11].mxu1  ;;  %v446_v44 = vpack.c.bf16 %v2470_v40, %v2463_v33 }
  0xf1   :  { %v282_v36 = vadd.f32 %v2426_v31, %v281_v32  ;;  %v445_v47 = vpack.c.bf16 %v432_v43, %v2467_v37  ;;  %v1937_v48 = vpop.f32.mrb[8].mxu0 }
  0xf2   :  { %v456_v39 = vpack.c.bf16 %v290_v30, %v287_v12  ;;  %v169_v51 = vadd.f32 %v1937_v48, %v2436_v41  ;;  %v160_v52 = vpop.f32.mrb[9].mxu0 }
  0xf3   :  { %v455_v42 = vpack.c.bf16 %v282_v36, %v279_v24  ;;  %v161_v56 = vadd.f32 %v2436_v41, %v160_v52  ;;  %v1938_v57 = vpop.f32.mrb[10].mxu0  ;;  %v509_v24 = vsel %vm69_vm0, %v454_v61, 0 }
  0xf4   :  { %v437_v60 = vmul.f32 0.17677669, %v169_v51  ;;  %v172_v63 = vadd.f32 %v1938_v57, %v2436_v41  ;;  %v163_v0 = vpop.f32.mrb[11].mxu0 }
  0xf5   :  { %v1961_v46 = vpop.f32.mrb[12].mxu1  ;;  %v435_v9 = vmul.f32 0.17677669, %v161_v56  ;;  %v164_v10 = vadd.f32 %v2436_v41, %v163_v0  ;;  %v512_v43 = vsel %vm69_vm0, %v455_v42, 0 }
  0xf6   :  { %1988 = vmatpush3.bf16.xpose.msra.mxu1 %v506_v45  ;;  %v303_v49 = vadd.f32 %v1961_v46, %v2426_v31  ;;  %v294_v50 = vpop.f32.mrb[13].mxu1  ;;  %v438_v12 = vmul.f32 0.17677669, %v172_v63  ;;  %v515_v46 = vsel %vm69_vm0, %v456_v39, 0 }
  0xf7   :  { %2102 = vmatprep.subr.msk.bf16.mxu1 %vm69_vm0, %v454_v61  ;;  %v295_v53 = vadd.f32 %v2426_v31, %v294_v50  ;;  %v1962_v54 = vpop.f32.mrb[14].mxu1  ;;  %v436_v18 = vmul.f32 0.17677669, %v164_v10 }
  0xf8   :  { %v306_v58 = vadd.f32 %v1962_v54, %v2426_v31  ;;  %v297_v59 = vpop.f32.mrb[15].mxu1  ;;  %v448_v23 = vpack.c.bf16 %v438_v12, %v437_v60 }
  0xf9   :  { %v298_v4 = vadd.f32 %v2426_v31, %v297_v59  ;;  %v447_v27 = vpack.c.bf16 %v436_v18, %v435_v9  ;;  %v1941_v28 = vpop.f32.mrb[12].mxu0 }
  0xfa   :  { %v458_v11 = vpack.c.bf16 %v306_v58, %v303_v49  ;;  %v185_v29 = vadd.f32 %v1941_v28, %v2436_v41  ;;  %v176_v30 = vpop.f32.mrb[13].mxu0 }
  0xfb   :  { %v457_v17 = vpack.c.bf16 %v298_v4, %v295_v53  ;;  %v177_v31 = vadd.f32 %v2436_v41, %v176_v30  ;;  %v1942_v32 = vpop.f32.mrb[14].mxu0  ;;  %v461_v30 = vld [vmem:[%s3286_s1 + $0x10] sm:$0xff] }
  0xfc   :  { %v441_v33 = vmul.f32 0.17677669, %v185_v29  ;;  %v188_v34 = vadd.f32 %v1942_v32, %v2436_v41  ;;  %v179_v35 = vpop.f32.mrb[15].mxu0 }
  0xfd   :  { %v439_v36 = vmul.f32 0.17677669, %v177_v31  ;;  %v180_v37 = vadd.f32 %v2436_v41, %v179_v35  ;;  %v518_v48 = vsel %vm69_vm0, %v457_v17, 0  ;;  %v521_v41 = vsel %vm69_vm0, %v458_v11, 0  ;;  %v459_v31 = vld [vmem:[%s3286_s1] sm:$0xff] }
  0xfe   :  { %1990 = vmatpush3.bf16.xpose.msra.mxu1 %v509_v24  ;;  %v442_v38 = vmul.f32 0.17677669, %v188_v34 }
  0xff   :  { %2103 = vmatprep.subr.msk.bf16.mxu1 %vm69_vm0, %v455_v42  ;;  %v440_v61 = vmul.f32 0.17677669, %v180_v37  ;;  %v2511_v42 = vld [vmem:[%s3285_s5 + $0x2] ss:$0 sm:$0xff] }
 0x100   :  { %v450_v40 = vpack.c.bf16 %v442_v38, %v441_v33 }
 0x101   :  { %v449_v45 = vpack.c.bf16 %v440_v61, %v439_v36  ;;  %v462_v36 = vld [vmem:[%s3286_s1 + $0x18] sm:$0xff]  ;;  %v460_v61 = vld [vmem:[%s3286_s1 + $0x8] sm:$0xff] }
 0x106   :  { %1992 = vmatpush3.bf16.xpose.msra.mxu1 %v512_v43 }
 0x107   :  { %2104 = vmatprep.subr.msk.bf16.mxu1 %vm69_vm0, %v456_v39  ;;  %v1969_v39 = vpop.f32.mrb[16].mxu0 }
 0x108   :  { %v373_v55 = vadd.f32 %v1969_v39, %v2511_v42  ;;  %v364_v62 = vpop.f32.mrb[17].mxu0 }
 0x10e   :  { %1994 = vmatpush3.bf16.xpose.msra.mxu1 %v515_v46 }
 0x10f   :  { %2105 = vmatprep.subr.msk.bf16.mxu1 %vm69_vm0, %v457_v17 }
 0x116   :  { %1996 = vmatpush3.bf16.xpose.msra.mxu1 %v518_v48 }
 0x117   :  { %2106 = vmatprep.subr.msk.bf16.mxu1 %vm69_vm0, %v458_v11 }
 0x11e   :  { %1998 = vmatpush3.bf16.xpose.msra.mxu1 %v521_v41  ;;  %v464_v41 = vld [vmem:[%s3286_s1 + $0x28] sm:$0xff] }
 0x125   :  { %2000 = vmatmul.mubr.msk.bf16.vlgmr.msra.gmra.mrb[16].mxu1 %vm69_vm0, %v444_v1  ;;  %v365_v1 = vadd.f32 %v2511_v42, %v364_v62  ;;  %v465_v62 = vld [vmem:[%s3286_s1 + $0x30] sm:$0xff] }
 0x126   :  { %2003 = vmatprep.mubr.msk.bf16.mxu1 %vm69_vm0, %v445_v47 }
 0x12d   :  { %2004 = vmatmul.mubr.msk.bf16.gmra.mrb[20].mxu1 %vm69_vm0, %v446_v44  ;;  %v1970_v44 = vpop.f32.mrb[18].mxu0 }
 0x12e   :  { %2007 = vmatprep.mubr.msk.bf16.mxu1 %vm69_vm0, %v447_v27  ;;  %v376_v47 = vadd.f32 %v1970_v44, %v2511_v42  ;;  %v367_v49 = vpop.f32.mrb[19].mxu0 }
 0x12f   :  { %v368_v50 = vadd.f32 %v2511_v42, %v367_v49  ;;  %v1973_v53 = vpop.f32.mrb[20].mxu0 }
 0x130   :  { %v741_v51 = vpack.c.bf16 %v376_v47, %v373_v55  ;;  %v389_v54 = vadd.f32 %v1973_v53, %v2511_v42  ;;  %v380_v56 = vpop.f32.mrb[21].mxu0  ;;  %v466_v47 = vld [vmem:[%s3286_s1 + $0x38] sm:$0xff] }
 0x131   :  { %v740_v52 = vpack.c.bf16 %v368_v50, %v365_v1  ;;  %v381_v57 = vadd.f32 %v2511_v42, %v380_v56  ;;  %v1974_v58 = vpop.f32.mrb[22].mxu0  ;;  %v467_v50 = vld [vmem:[%s3286_s1 + $0x40] sm:$0xff] }
 0x132   :  { %v392_v59 = vadd.f32 %v1974_v58, %v2511_v42  ;;  %v383_v60 = vpop.f32.mrb[23].mxu0 }
 0x133   :  { %2015 = vmatprep.subr.bf16.mxu0 %v740_v52  ;;  %v384_v63 = vadd.f32 %v2511_v42, %v383_v60  ;;  %v1977_v9 = vpop.f32.mrb[24].mxu0 }
 0x134   :  { %2016 = vmatpush3.bf16.msra.mxu0 %v740_v52  ;;  %v743_v0 = vpack.c.bf16 %v392_v59, %v389_v54  ;;  %v405_v10 = vadd.f32 %v1977_v9, %v2511_v42  ;;  %v396_v11 = vpop.f32.mrb[25].mxu0  ;;  %v468_v54 = vld [vmem:[%s3286_s1 + $0x48] sm:$0xff]  ;;  %v469_v59 = vld [vmem:[%s3286_s1 + $0x50] sm:$0xff] }
 0x135   :  { %2008 = vmatmul.mubr.msk.bf16.gmra.mrb[24].mxu1 %vm69_vm0, %v448_v23  ;;  %2017 = vmatprep.subr.bf16.mxu0 %v741_v51  ;;  %v742_v4 = vpack.c.bf16 %v384_v63, %v381_v57  ;;  %v397_v12 = vadd.f32 %v2511_v42, %v396_v11  ;;  %v1978_v17 = vpop.f32.mrb[26].mxu0 }
 0x136   :  { %2011 = vmatprep.mubr.msk.bf16.mxu1 %vm69_vm0, %v449_v45  ;;  %v408_v18 = vadd.f32 %v1978_v17, %v2511_v42  ;;  %v399_v23 = vpop.f32.mrb[27].mxu0  ;;  %v463_v45 = vld [vmem:[%s3286_s1 + $0x20] sm:$0xff] }
 0x137   :  { %v400_v24 = vadd.f32 %v2511_v42, %v399_v23  ;;  %v1981_v29 = vpop.f32.mrb[28].mxu0  ;;  %v471_v23 = vld [vmem:[%s3286_s1 + $0x60] sm:$0xff] }
 0x138   :  { %2018 = vmatpush3.bf16.msra.mxu0 %v741_v51  ;;  %v745_v27 = vpack.c.bf16 %v408_v18, %v405_v10  ;;  %v412_v58 = vpop.f32.mrb[29].mxu0  ;;  %v470_v10 = vld [vmem:[%s3286_s1 + $0x58] sm:$0xff] }
 0x139   :  { %2019 = vmatprep.subr.bf16.mxu0 %v742_v4  ;;  %v744_v28 = vpack.c.bf16 %v400_v24, %v397_v12  ;;  %v1982_v63 = vpop.f32.mrb[30].mxu0  ;;  %v413_v11 = vadd.f32 %v2511_v42, %v412_v58 }
 0x13a   :  { %v415_v9 = vpop.f32.mrb[31].mxu0  ;;  %v424_v18 = vadd.f32 %v1982_v63, %v2511_v42 }
 0x13b   :  { %v416_v12 = vadd.f32 %v2511_v42, %v415_v9 }
 0x13c   :  { %2020 = vmatpush3.bf16.msra.mxu0 %v742_v4  ;;  %v421_v4 = vadd.f32 %v1981_v29, %v2511_v42 }
 0x13d   :  { %2012 = vmatmul.mubr.msk.bf16.gmra.mrb[28].mxu1 %vm69_vm0, %v450_v40  ;;  %2021 = vmatprep.subr.bf16.mxu0 %v743_v0  ;;  %v746_v24 = vpack.c.bf16 %v416_v12, %v413_v11 }
 0x13e   :  { %v747_v29 = vpack.c.bf16 %v424_v18, %v421_v4 }
 0x140   :  { %2022 = vmatpush3.bf16.msra.mxu0 %v743_v0 }
 0x141   :  { %2023 = vmatprep.subr.bf16.mxu0 %v744_v28 }
 0x144   :  { %2024 = vmatpush3.bf16.msra.mxu0 %v744_v28 }
 0x145   :  { %2025 = vmatprep.subr.bf16.mxu0 %v745_v27 }
 0x148   :  { %2026 = vmatpush3.bf16.msra.mxu0 %v745_v27 }
 0x149   :  { %2027 = vmatprep.subr.bf16.mxu0 %v746_v24 }
 0x14c   :  { %2028 = vmatpush3.bf16.msra.mxu0 %v746_v24 }
 0x14d   :  { %2029 = vmatprep.subr.bf16.mxu0 %v747_v29 }
 0x150   :  { %2030 = vmatpush3.bf16.msra.mxu0 %v747_v29 }
 0x1f8   :  { %v2001_v32 = vpop.f32.mrb[16].mxu1 }
 0x1f9   :  { %v2531_v33 = vadd.f32 %v2001_v32, %v461_v30  ;;  %v557_v34 = vpop.f32.mrb[17].mxu1 }
 0x1fa   :  { %v2533_v35 = vadd.f32 %v557_v34, %v459_v31  ;;  %v2002_v37 = vpop.f32.mrb[18].mxu1  ;;  %v472_v31 = vld [vmem:[%s3286_s1 + $0x68] sm:$0xff]  ;;  %v473_v34 = vld [vmem:[%s3286_s1 + $0x70] sm:$0xff] }
 0x1fb   :  { %624 = vmax.xlane.f32.xlu1 %v2531_v33  ;;  %v560_v38 = vpop.f32.mrb[19].mxu1  ;;  %v2543_v40 = vadd.f32 %v2002_v37, %v462_v36 }
 0x1fc   :  { %620 = vmax.xlane.f32.xlu0 %v2533_v35  ;;  %v2545_v43 = vadd.f32 %v560_v38, %v460_v61  ;;  %v474_v38 = vld [vmem:[%s3286_s1 + $0x78] sm:$0xff] }
 0x1ff   :  { %626 = vmax.xlane.f32.xlu1 %v2543_v40 }
 0x200   :  { %v2005_v46 = vpop.f32.mrb[20].mxu1  ;;  %622 = vmax.xlane.f32.xlu0 %v2545_v43 }
 0x201   :  { %v573_v48 = vpop.f32.mrb[21].mxu1  ;;  %v2566_v49 = vadd.f32 %v2005_v46, %v465_v62 }
 0x202   :  { %v2555_v39 = vadd.f32 %v573_v48, %v463_v45  ;;  %v2006_v55 = vpop.f32.mrb[22].mxu1 }
 0x203   :  { %v576_v1 = vpop.f32.mrb[23].mxu1  ;;  %v2572_v51 = vadd.f32 %v2006_v55, %v466_v47 }
 0x204   :  { %v2560_v44 = vadd.f32 %v576_v1, %v464_v41  ;;  %628 = vmax.xlane.f32.xlu0 %v2555_v39 }
 0x206   :  { %630 = vmax.xlane.f32.xlu1 %v2560_v44 }
 0x208   :  { %v2009_v52 = vpop.f32.mrb[24].mxu1  ;;  %632 = vmax.xlane.f32.xlu0 %v2566_v49 }
 0x209   :  { %v589_v53 = vpop.f32.mrb[25].mxu1  ;;  %v2593_v17 = vadd.f32 %v2009_v52, %v469_v59 }
 0x20a   :  { %v2578_v56 = vadd.f32 %v589_v53, %v467_v50  ;;  %v2010_v57 = vpop.f32.mrb[26].mxu1  ;;  %634 = vmax.xlane.f32.xlu1 %v2572_v51 }
 0x20b   :  { %v592_v60 = vpop.f32.mrb[27].mxu1  ;;  %v2600_v27 = vadd.f32 %v2010_v57, %v470_v10 }
 0x20c   :  { %v2584_v0 = vadd.f32 %v592_v60, %v468_v54  ;;  %636 = vmax.xlane.f32.xlu0 %v2578_v56 }
 0x20e   :  { %638 = vmax.xlane.f32.xlu1 %v2584_v0 }
 0x210   :  { %v2013_v28 = vpop.f32.mrb[28].mxu1  ;;  %640 = vmax.xlane.f32.xlu0 %v2593_v17 }
 0x211   :  { %v605_v30 = vpop.f32.mrb[29].mxu1  ;;  %v2618_v61 = vadd.f32 %v2013_v28, %v473_v34 }
 0x212   :  { %v2606_v32 = vadd.f32 %v605_v30, %v471_v23  ;;  %v2014_v42 = vpop.f32.mrb[30].mxu1  ;;  %642 = vmax.xlane.f32.xlu1 %v2600_v27 }
 0x213   :  { %v608_v36 = vpop.f32.mrb[31].mxu1  ;;  %v2621_v45 = vadd.f32 %v2014_v42, %v474_v38 }
 0x214   :  { %v2612_v37 = vadd.f32 %v608_v36, %v472_v31  ;;  %644 = vmax.xlane.f32.xlu0 %v2606_v32 }
 0x216   :  { %646 = vmax.xlane.f32.xlu1 %v2612_v37 }
 0x218   :  { %648 = vmax.xlane.f32.xlu0 %v2618_v61 }
 0x21a   :  { %650 = vmax.xlane.f32.xlu1 %v2621_v45 }
 0x288   :  { %v625_v46 = vpop.xlane.xlu1 %624 }
 0x289   :  { %v654_v48 = vsub.f32 %v2531_v33, %v625_v46  ;;  %v621_v41 = vpop.xlane.xlu0 %620 }
 0x28a   :  { %v652_v55 = vsub.f32 %v2533_v35, %v621_v41 }
 0x28b   :  { %v672_v62 = vmul.f32 1.442695, %v654_v48 }
 0x28c   :  { %v668_v1 = vmul.f32 1.442695, %v652_v55  ;;  %v627_v47 = vpop.xlane.xlu1 %626 }
 0x28d   :  { %v655_v50 = vsub.f32 %v2543_v40, %v627_v47  ;;  %v623_v52 = vpop.xlane.xlu0 %622 }
 0x28e   :  { %2123 = vpow2.f32 %v668_v1  ;;  %v653_v53 = vsub.f32 %v2545_v43, %v623_v52 }
 0x28f   :  { %v674_v54 = vmul.f32 1.442695, %v655_v50  ;;  %2125 = vpow2.f32 %v672_v62 }
 0x290   :  { %v670_v57 = vmul.f32 1.442695, %v653_v53 }
 0x291   :  { %2127 = vpow2.f32 %v674_v54  ;;  %v629_v58 = vpop.xlane.xlu0 %628 }
 0x292   :  { %2129 = vpow2.f32 %v670_v57  ;;  %v656_v33 = vsub.f32 %v2555_v39, %v629_v58 }
 0x293   :  { %v631_v59 = vpop.xlane.xlu1 %630 }
 0x294   :  { %v676_v60 = vmul.f32 1.442695, %v656_v33  ;;  %v657_v35 = vsub.f32 %v2560_v44, %v631_v59 }
 0x295   :  { %v633_v63 = vpop.xlane.xlu0 %632 }
 0x296   :  { %2131 = vpow2.f32 %v676_v60  ;;  %v678_v4 = vmul.f32 1.442695, %v657_v35  ;;  %v658_v40 = vsub.f32 %v2566_v49, %v633_v63 }
 0x297   :  { %v635_v9 = vpop.xlane.xlu1 %634 }
 0x298   :  { %v2124_v10 = vpop.eup %2123  ;;  %2133 = vpow2.f32 %v678_v4  ;;  %v680_v43 = vmul.f32 1.442695, %v658_v40  ;;  %v659_v11 = vsub.f32 %v2572_v51, %v635_v9 }
 0x299   :  { %700 = vadd.xlane.f32.xlu0 %v2124_v10  ;;  %v637_v12 = vpop.xlane.xlu0 %636  ;;  %v2126_v18 = vpop.eup %2125 }
 0x29a   :  { %2135 = vpow2.f32 %v680_v43  ;;  %v682_v39 = vmul.f32 1.442695, %v659_v11  ;;  %v660_v23 = vsub.f32 %v2578_v56, %v637_v12 }
 0x29b   :  { %v2128_v24 = vpop.eup %2127  ;;  %v639_v44 = vpop.xlane.xlu1 %638 }
 0x29c   :  { %v2130_v28 = vpop.eup %2129  ;;  %2137 = vpow2.f32 %v682_v39  ;;  %v684_v29 = vmul.f32 1.442695, %v660_v23  ;;  %v661_v49 = vsub.f32 %v2584_v0, %v639_v44  ;;  %v733_v34 = vpack.c.bf16 %v2128_v24, %v2126_v18 }
 0x29d   :  { %704 = vadd.xlane.f32.xlu0 %v2126_v18  ;;  %702 = vadd.xlane.f32.xlu1 %v2130_v28  ;;  %v641_v30 = vpop.xlane.xlu0 %640  ;;  %v732_v31 = vpack.c.bf16 %v2130_v28, %v2124_v10 }
 0x29e   :  { %2139 = vpow2.f32 %v684_v29  ;;  %v686_v51 = vmul.f32 1.442695, %v661_v49  ;;  %v662_v42 = vsub.f32 %v2593_v17, %v641_v30 }
 0x29f   :  { %v643_v36 = vpop.xlane.xlu1 %642  ;;  %2031 = vmatprep.mubr.bf16.mxu0 %v732_v31 }
 0x2a0   :  { %v2132_v38 = vpop.eup %2131  ;;  %2141 = vpow2.f32 %v686_v51  ;;  %v688_v56 = vmul.f32 1.442695, %v662_v42  ;;  %v663_v46 = vsub.f32 %v2600_v27, %v643_v36  ;;  %2032 = vmatmul.mubr.bf16.vlgmr.msra.gmra.mrb[32].mxu0 %v733_v34 }
 0x2a1   :  { %706 = vadd.xlane.f32.xlu1 %v2128_v24  ;;  %708 = vadd.xlane.f32.xlu0 %v2132_v38  ;;  %v645_v0 = vpop.xlane.xlu0 %644 }
 0x2a2   :  { %v2134_v48 = vpop.eup %2133  ;;  %2143 = vpow2.f32 %v688_v56  ;;  %v690_v41 = vmul.f32 1.442695, %v663_v46  ;;  %v664_v55 = vsub.f32 %v2606_v32, %v645_v0 }
 0x2a3   :  { %v647_v62 = vpop.xlane.xlu1 %646  ;;  %v734_v1 = vpack.c.bf16 %v2134_v48, %v2132_v38 }
 0x2a4   :  { %v2136_v17 = vpop.eup %2135  ;;  %2145 = vpow2.f32 %v690_v41  ;;  %v692_v47 = vmul.f32 1.442695, %v664_v55  ;;  %v665_v50 = vsub.f32 %v2612_v37, %v647_v62 }
 0x2a5   :  { %710 = vadd.xlane.f32.xlu1 %v2134_v48  ;;  %2035 = vmatprep.mubr.bf16.mxu0 %v734_v1  ;;  %v649_v52 = vpop.xlane.xlu0 %648 }
 0x2a6   :  { %v2138_v27 = vpop.eup %2137  ;;  %2147 = vpow2.f32 %v692_v47  ;;  %v694_v53 = vmul.f32 1.442695, %v665_v50  ;;  %712 = vadd.xlane.f32.xlu0 %v2136_v17  ;;  %v666_v54 = vsub.f32 %v2618_v61, %v649_v52 }
 0x2a7   :  { %v651_v57 = vpop.xlane.xlu1 %650  ;;  %v735_v58 = vpack.c.bf16 %v2138_v27, %v2136_v17 }
 0x2a8   :  { %v2140_v33 = vpop.eup %2139  ;;  %2149 = vpow2.f32 %v694_v53  ;;  %v696_v32 = vmul.f32 1.442695, %v666_v54  ;;  %v667_v59 = vsub.f32 %v2621_v45, %v651_v57 }
 0x2a9   :  { %714 = vadd.xlane.f32.xlu1 %v2138_v27  ;;  %2036 = vmatmul.mubr.bf16.gmra.mrb[36].mxu0 %v735_v58 }
 0x2aa   :  { %v2142_v60 = vpop.eup %2141  ;;  %2151 = vpow2.f32 %v696_v32  ;;  %v698_v37 = vmul.f32 1.442695, %v667_v59  ;;  %716 = vadd.xlane.f32.xlu0 %v2140_v33 }
 0x2ab   :  { %v736_v35 = vpack.c.bf16 %v2142_v60, %v2140_v33 }
 0x2ac   :  { %v2144_v63 = vpop.eup %2143  ;;  %2153 = vpow2.f32 %v698_v37 }
 0x2ad   :  { %718 = vadd.xlane.f32.xlu1 %v2142_v60  ;;  %2039 = vmatprep.mubr.bf16.mxu0 %v736_v35 }
 0x2ae   :  { %v2146_v4 = vpop.eup %2145  ;;  %720 = vadd.xlane.f32.xlu0 %v2144_v63 }
 0x2af   :  { %v737_v61 = vpack.c.bf16 %v2146_v4, %v2144_v63 }
 0x2b0   :  { %v2148_v40 = vpop.eup %2147 }
 0x2b1   :  { %722 = vadd.xlane.f32.xlu1 %v2146_v4  ;;  %2040 = vmatmul.mubr.bf16.gmra.mrb[40].mxu0 %v737_v61 }
 0x2b2   :  { %v2150_v9 = vpop.eup %2149  ;;  %724 = vadd.xlane.f32.xlu0 %v2148_v40 }
 0x2b3   :  { %v738_v45 = vpack.c.bf16 %v2150_v9, %v2148_v40 }
 0x2b4   :  { %v2152_v10 = vpop.eup %2151 }
 0x2b5   :  { %726 = vadd.xlane.f32.xlu1 %v2150_v9  ;;  %2043 = vmatprep.mubr.bf16.mxu0 %v738_v45 }
 0x2b6   :  { %v2154_v43 = vpop.eup %2153  ;;  %728 = vadd.xlane.f32.xlu0 %v2152_v10 }
 0x2b7   :  { %v739_v11 = vpack.c.bf16 %v2154_v43, %v2152_v10 }
 0x2b9   :  { %730 = vadd.xlane.f32.xlu1 %v2154_v43  ;;  %2044 = vmatmul.mubr.bf16.gmra.mrb[44].mxu0 %v739_v11 }
 0x326   :  { %v701_v12 = vpop.xlane.xlu0 %700 }
 0x327   :  { %2155 = vrcp.f32 %v701_v12 }
 0x32a   :  { %v703_v18 = vpop.xlane.xlu1 %702  ;;  %v705_v39 = vpop.xlane.xlu0 %704 }
 0x32b   :  { %2157 = vrcp.f32 %v705_v39 }
 0x32c   :  { %2159 = vrcp.f32 %v703_v18 }
 0x32e   :  { %v707_v23 = vpop.xlane.xlu1 %706  ;;  %v709_v24 = vpop.xlane.xlu0 %708 }
 0x32f   :  { %2161 = vrcp.f32 %v707_v23 }
 0x330   :  { %2163 = vrcp.f32 %v709_v24 }
 0x331   :  { %v2156_v31 = vpop.eup %2155 }
 0x332   :  { %v711_v44 = vpop.xlane.xlu1 %710 }
 0x333   :  { %v713_v28 = vpop.xlane.xlu0 %712 }
 0x334   :  { %2165 = vrcp.f32 %v713_v28 }
 0x335   :  { %v2158_v42 = vpop.eup %2157  ;;  %2167 = vrcp.f32 %v711_v44 }
 0x336   :  { %v715_v29 = vpop.xlane.xlu1 %714  ;;  %v2160_v38 = vpop.eup %2159 }
 0x337   :  { %v717_v49 = vpop.xlane.xlu0 %716  ;;  %2169 = vrcp.f32 %v715_v29 }
 0x338   :  { %2171 = vrcp.f32 %v717_v49 }
 0x339   :  { %v2162_v48 = vpop.eup %2161 }
 0x33a   :  { %v719_v30 = vpop.xlane.xlu1 %718 }
 0x33b   :  { %v721_v34 = vpop.xlane.xlu0 %720 }
 0x33c   :  { %2173 = vrcp.f32 %v721_v34 }
 0x33d   :  { %2175 = vrcp.f32 %v719_v30 }
 0x33e   :  { %v723_v41 = vpop.xlane.xlu1 %722 }
 0x33f   :  { %v725_v27 = vpop.xlane.xlu0 %724  ;;  %2177 = vrcp.f32 %v723_v41 }
 0x340   :  { %2179 = vrcp.f32 %v725_v27 }
 0x342   :  { %v727_v57 = vpop.xlane.xlu1 %726 }
 0x343   :  { %v729_v4 = vpop.xlane.xlu0 %728 }
 0x344   :  { %2181 = vrcp.f32 %v729_v4 }
 0x345   :  { %2183 = vrcp.f32 %v727_v57 }
 0x346   :  { %v731_v45 = vpop.xlane.xlu1 %730 }
 0x347   :  { %2185 = vrcp.f32 %v731_v45 }
 0x373   :  { %v2033_v51 = vpop.f32.mrb[32].mxu0 }
 0x374   :  { %v782_v36 = vpop.f32.mrb[33].mxu0  ;;  %v863_v56 = vmul.f32 %v2158_v42, %v2033_v51 }
 0x375   :  { %v861_v46 = vmul.f32 %v2156_v31, %v782_v36  ;;  %v2034_v0 = vpop.f32.mrb[34].mxu0 }
 0x376   :  { %v785_v55 = vpop.f32.mrb[35].mxu0  ;;  %v864_v62 = vmul.f32 %v2162_v48, %v2034_v0  ;;  %v2650_v52 = vadd.f32 %v863_v56, %v2307_v5 }
 0x377   :  { %v862_v1 = vmul.f32 %v2160_v38, %v785_v55  ;;  %v2642_v17 = vadd.f32 %v861_v46, %v2295_v2  ;;  %v2164_v2 = vpop.eup %2163 }
 0x378   :  { %v2655_v54 = vadd.f32 %v864_v62, %v2312_v6  ;;  %v901_v5 = vsel %vm69_vm0, %v2650_v52, 0.0 }
 0x379   :  { %v895_v47 = vsel %vm69_vm0, %v2642_v17, 0.0  ;;  %v2647_v50 = vadd.f32 %v862_v1, %v2300_v3  ;;  %v2166_v3 = vpop.eup %2165 }
 0x37a   :  { %896 = vadd.xlane.f32.xlu0 %v895_v47  ;;  %v2168_v32 = vpop.eup %2167  ;;  %v904_v6 = vsel %vm69_vm0, %v2655_v54, 0.0 }
 0x37b   :  { %v898_v53 = vsel %vm69_vm0, %v2647_v50, 0.0  ;;  %v2170_v35 = vpop.eup %2169 }
 0x37c   :  { %899 = vadd.xlane.f32.xlu1 %v898_v53  ;;  %v2037_v58 = vpop.f32.mrb[36].mxu0  ;;  %v2172_v12 = vpop.eup %2171 }
 0x37d   :  { %v798_v33 = vpop.f32.mrb[37].mxu0  ;;  %v867_v59 = vmul.f32 %v2166_v3, %v2037_v58  ;;  %v2174_v23 = vpop.eup %2173 }
 0x37e   :  { %v865_v60 = vmul.f32 %v2164_v2, %v798_v33  ;;  %v2038_v37 = vpop.f32.mrb[38].mxu0  ;;  %902 = vadd.xlane.f32.xlu0 %v901_v5 }
 0x37f   :  { %v801_v63 = vpop.f32.mrb[39].mxu0  ;;  %v868_v61 = vmul.f32 %v2170_v35, %v2038_v37  ;;  %v2670_v11 = vadd.f32 %v867_v59, %v2341_v13 }
 0x380   :  { %v866_v40 = vmul.f32 %v2168_v32, %v801_v63  ;;  %905 = vadd.xlane.f32.xlu1 %v904_v6  ;;  %v2662_v9 = vadd.f32 %v865_v60, %v2317_v7 }
 0x381   :  { %v2675_v39 = vadd.f32 %v868_v61, %v2346_v14  ;;  %v913_v29 = vsel %vm69_vm0, %v2670_v11, 0.0 }
 0x382   :  { %v907_v10 = vsel %vm69_vm0, %v2662_v9, 0.0  ;;  %v2667_v43 = vadd.f32 %v866_v40, %v2322_v8  ;;  %v2176_v8 = vpop.eup %2175 }
 0x383   :  { %908 = vadd.xlane.f32.xlu0 %v907_v10  ;;  %v2178_v49 = vpop.eup %2177  ;;  %v916_v14 = vsel %vm69_vm0, %v2675_v39, 0.0 }
 0x384   :  { %v2041_v18 = vpop.f32.mrb[40].mxu0  ;;  %v910_v7 = vsel %vm69_vm0, %v2667_v43, 0.0  ;;  %v2180_v56 = vpop.eup %2179 }
 0x385   :  { %911 = vadd.xlane.f32.xlu1 %v910_v7  ;;  %v814_v24 = vpop.f32.mrb[41].mxu0  ;;  %v871_v44 = vmul.f32 %v2174_v23, %v2041_v18 }
 0x386   :  { %v869_v28 = vmul.f32 %v2172_v12, %v814_v24  ;;  %v2042_v13 = vpop.f32.mrb[42].mxu0 }
 0x387   :  { %v817_v30 = vpop.f32.mrb[43].mxu0  ;;  %914 = vadd.xlane.f32.xlu0 %v913_v29  ;;  %v872_v31 = vmul.f32 %v2178_v49, %v2042_v13  ;;  %v2690_v38 = vadd.f32 %v871_v44, %v2368_v19 }
 0x388   :  { %v870_v51 = vmul.f32 %v2176_v8, %v817_v30  ;;  %v2682_v42 = vadd.f32 %v869_v28, %v2351_v15  ;;  %v2182_v15 = vpop.eup %2181 }
 0x389   :  { %917 = vadd.xlane.f32.xlu1 %v916_v14  ;;  %v2695_v48 = vadd.f32 %v872_v31, %v2373_v20  ;;  %v2184_v55 = vpop.eup %2183  ;;  %v925_v19 = vsel %vm69_vm0, %v2690_v38, 0.0 }
 0x38a   :  { %v919_v34 = vsel %vm69_vm0, %v2682_v42, 0.0  ;;  %v2687_v36 = vadd.f32 %v870_v51, %v2356_v16  ;;  %v2186_v47 = vpop.eup %2185 }
 0x38b   :  { %920 = vadd.xlane.f32.xlu0 %v919_v34  ;;  %v928_v57 = vsel %vm69_vm0, %v2695_v48, 0.0 }
 0x38c   :  { %v2045_v46 = vpop.f32.mrb[44].mxu0  ;;  %v922_v0 = vsel %vm69_vm0, %v2687_v36, 0.0 }
 0x38d   :  { %923 = vadd.xlane.f32.xlu1 %v922_v0  ;;  %v830_v41 = vpop.f32.mrb[45].mxu0  ;;  %v875_v62 = vmul.f32 %v2182_v15, %v2045_v46 }
 0x38e   :  { %v873_v1 = vmul.f32 %v2180_v56, %v830_v41  ;;  %v2046_v16 = vpop.f32.mrb[46].mxu0 }
 0x38f   :  { %v833_v27 = vpop.f32.mrb[47].mxu0  ;;  %926 = vadd.xlane.f32.xlu0 %v925_v19  ;;  %v876_v53 = vmul.f32 %v2186_v47, %v2046_v16  ;;  %v2710_v33 = vadd.f32 %v875_v62, %v2396_v25 }
 0x390   :  { %v874_v2 = vmul.f32 %v2184_v55, %v833_v27  ;;  %v2702_v20 = vadd.f32 %v873_v1, %v2379_v21 }
 0x391   :  { %929 = vadd.xlane.f32.xlu1 %v928_v57  ;;  %v2715_v32 = vadd.f32 %v876_v53, %v2401_v26  ;;  %v937_v21 = vsel %vm69_vm0, %v2710_v33, 0.0 }
 0x392   :  { %v931_v58 = vsel %vm69_vm0, %v2702_v20, 0.0  ;;  %v2707_v3 = vadd.f32 %v874_v2, %v2384_v22  ;;  %v2113_v22 = vld [vmem:[%s3287_s3] sm:$0xff]  }
 0x393   :  { %932 = vadd.xlane.f32.xlu0 %v931_v58  ;;  %v940_v59 = vsel %vm69_vm0, %v2715_v32, 0.0  ;;  %2047 = vmatprep.subr.bf16.mxu0 %v2113_v22 }
 0x394   :  { %v934_v5 = vsel %vm69_vm0, %v2707_v3, 0.0  ;;  %2048 = vmatpush3.bf16.msra.mxu0 %v2113_v22 }
 0x395   :  { %935 = vadd.xlane.f32.xlu1 %v934_v5 }
 0x397   :  { %938 = vadd.xlane.f32.xlu0 %v937_v21 }
 0x399   :  { %941 = vadd.xlane.f32.xlu1 %v940_v59 }
 0x407   :  { %v897_v25 = vpop.xlane.xlu0 %896 }
 0x408   :  { %v944_v60 = vmul.f32 0.03125, %v897_v25 }
 0x409   :  { %v900_v37 = vpop.xlane.xlu1 %899 }
 0x40a   :  { %v2725_v26 = vsub.f32 %v2642_v17, %v944_v60  ;;  %v945_v35 = vmul.f32 0.03125, %v900_v37 }
 0x40b   :  { %v903_v63 = vpop.xlane.xlu0 %902 }
 0x40c   :  { %v2728_v6 = vsub.f32 %v2647_v50, %v945_v35  ;;  %v946_v4 = vmul.f32 0.03125, %v903_v63  ;;  %v976_v61 = vmul.f32 %v2725_v26, %v2725_v26 }
 0x40d   :  { %v906_v40 = vpop.xlane.xlu1 %905 }
 0x40e   :  { %v2733_v45 = vsub.f32 %v2650_v52, %v946_v4  ;;  %v947_v10 = vmul.f32 0.03125, %v906_v40  ;;  %v992_v12 = vsel %vm69_vm0, %v976_v61, 0.0  ;;  %v977_v17 = vmul.f32 %v2728_v6, %v2728_v6 }
 0x40f   :  { %993 = vadd.xlane.f32.xlu0 %v992_v12 }
 0x410   :  { %v2739_v18 = vsub.f32 %v2655_v54, %v947_v10  ;;  %v909_v50 = vpop.xlane.xlu0 %908  ;;  %v995_v7 = vsel %vm69_vm0, %v977_v17, 0.0  ;;  %v978_v23 = vmul.f32 %v2733_v45, %v2733_v45 }
 0x411   :  { %v948_v24 = vmul.f32 0.03125, %v909_v50  ;;  %996 = vadd.xlane.f32.xlu1 %v995_v7 }
 0x412   :  { %v912_v52 = vpop.xlane.xlu1 %911  ;;  %v998_v8 = vsel %vm69_vm0, %v978_v23, 0.0  ;;  %v979_v44 = vmul.f32 %v2739_v18, %v2739_v18 }
 0x413   :  { %v2748_v28 = vsub.f32 %v2662_v9, %v948_v24  ;;  %v949_v13 = vmul.f32 0.03125, %v912_v52  ;;  %999 = vadd.xlane.f32.xlu0 %v998_v8 }
 0x414   :  { %v915_v54 = vpop.xlane.xlu0 %914  ;;  %v1001_v29 = vsel %vm69_vm0, %v979_v44, 0.0  ;;  %v2115_v44 = vld [vmem:[%s3288_s4] sm:$0xff]  }
 0x415   :  { %v2752_v49 = vsub.f32 %v2667_v43, %v949_v13  ;;  %v950_v30 = vmul.f32 0.03125, %v915_v54  ;;  %1002 = vadd.xlane.f32.xlu1 %v1001_v29  ;;  %v980_v31 = vmul.f32 %v2748_v28, %v2748_v28  ;;  %v2116_v13 = vld [vmem:[%s3288_s4 + $0x8] sm:$0xff]   ;;  %2067 = vmatprep.subr.bf16.mxu1 %v2115_v44  ;;  %v2117_v54 = vld [vmem:[%s3288_s4 + $0x10] sm:$0xff]   ;;  %v2118_v29 = vld [vmem:[%s3288_s4 + $0x18] sm:$0xff]  }
 0x416   :  { %v918_v51 = vpop.xlane.xlu1 %917  ;;  %2068 = vmatpush3.bf16.msra.mxu1 %v2115_v44 }
 0x417   :  { %v2757_v14 = vsub.f32 %v2670_v11, %v950_v30  ;;  %v951_v34 = vmul.f32 0.03125, %v918_v51  ;;  %v1004_v9 = vsel %vm69_vm0, %v980_v31, 0.0  ;;  %v981_v56 = vmul.f32 %v2752_v49, %v2752_v49  ;;  %2069 = vmatprep.subr.bf16.mxu1 %v2116_v13  ;;  %v2119_v30 = vld [vmem:[%s3288_s4 + $0x20] sm:$0xff]   ;;  %v2120_v31 = vld [vmem:[%s3288_s4 + $0x28] sm:$0xff]  }
 0x418   :  { %1005 = vadd.xlane.f32.xlu0 %v1004_v9  ;;  %v921_v46 = vpop.xlane.xlu0 %920 }
 0x419   :  { %v2763_v43 = vsub.f32 %v2675_v39, %v951_v34  ;;  %v952_v0 = vmul.f32 0.03125, %v921_v46  ;;  %v1007_v15 = vsel %vm69_vm0, %v981_v56, 0.0  ;;  %v982_v41 = vmul.f32 %v2757_v14, %v2757_v14 }
 0x41a   :  { %v924_v55 = vpop.xlane.xlu1 %923  ;;  %1008 = vadd.xlane.f32.xlu1 %v1007_v15  ;;  %2070 = vmatpush3.bf16.msra.mxu1 %v2116_v13 }
 0x41b   :  { %v2769_v11 = vsub.f32 %v2682_v42, %v952_v0  ;;  %v953_v62 = vmul.f32 0.03125, %v924_v55  ;;  %v1010_v1 = vsel %vm69_vm0, %v982_v41, 0.0  ;;  %v983_v16 = vmul.f32 %v2763_v43, %v2763_v43  ;;  %2071 = vmatprep.subr.bf16.mxu1 %v2117_v54 }
 0x41c   :  { %1011 = vadd.xlane.f32.xlu0 %v1010_v1  ;;  %v927_v39 = vpop.xlane.xlu0 %926 }
 0x41d   :  { %v2775_v19 = vsub.f32 %v2687_v36, %v953_v62  ;;  %v954_v47 = vmul.f32 0.03125, %v927_v39  ;;  %v1013_v27 = vsel %vm69_vm0, %v983_v16, 0.0  ;;  %v984_v53 = vmul.f32 %v2769_v11, %v2769_v11 }
 0x41e   :  { %v930_v2 = vpop.xlane.xlu1 %929  ;;  %1014 = vadd.xlane.f32.xlu1 %v1013_v27  ;;  %2072 = vmatpush3.bf16.msra.mxu1 %v2117_v54 }
 0x41f   :  { %v2781_v42 = vsub.f32 %v2690_v38, %v954_v47  ;;  %v955_v57 = vmul.f32 0.03125, %v930_v2  ;;  %v1016_v58 = vsel %vm69_vm0, %v984_v53, 0.0  ;;  %v985_v5 = vmul.f32 %v2775_v19, %v2775_v19  ;;  %2073 = vmatprep.subr.bf16.mxu1 %v2118_v29 }
 0x420   :  { %1017 = vadd.xlane.f32.xlu0 %v1016_v58  ;;  %v933_v36 = vpop.xlane.xlu0 %932 }
 0x421   :  { %v2787_v21 = vsub.f32 %v2695_v48, %v955_v57  ;;  %v956_v59 = vmul.f32 0.03125, %v933_v36  ;;  %v1019_v22 = vsel %vm69_vm0, %v985_v5, 0.0  ;;  %v986_v25 = vmul.f32 %v2781_v42, %v2781_v42 }
 0x422   :  { %1020 = vadd.xlane.f32.xlu1 %v1019_v22  ;;  %v936_v38 = vpop.xlane.xlu1 %935  ;;  %2074 = vmatpush3.bf16.msra.mxu1 %v2118_v29 }
 0x423   :  { %v2793_v60 = vsub.f32 %v2702_v20, %v956_v59  ;;  %v957_v37 = vmul.f32 0.03125, %v936_v38  ;;  %v1022_v35 = vsel %vm69_vm0, %v986_v25, 0.0  ;;  %v987_v63 = vmul.f32 %v2787_v21, %v2787_v21  ;;  %2075 = vmatprep.subr.bf16.mxu1 %v2119_v30  ;;  %v2845_v25 = vld [vmem:[%s3285_s5 + $0x3] ss:$0 sm:$0xff] }
 0x424   :  { %1023 = vadd.xlane.f32.xlu0 %v1022_v35  ;;  %v939_v48 = vpop.xlane.xlu0 %938 }
 0x425   :  { %v2799_v4 = vsub.f32 %v2707_v3, %v957_v37  ;;  %v958_v61 = vmul.f32 0.03125, %v939_v48  ;;  %v1025_v40 = vsel %vm69_vm0, %v987_v63, 0.0  ;;  %v988_v10 = vmul.f32 %v2793_v60, %v2793_v60 }
 0x426   :  { %1026 = vadd.xlane.f32.xlu1 %v1025_v40  ;;  %v942_v20 = vpop.xlane.xlu1 %941  ;;  %2076 = vmatpush3.bf16.msra.mxu1 %v2119_v30 }
 0x427   :  { %v2805_v12 = vsub.f32 %v2710_v33, %v958_v61  ;;  %v959_v17 = vmul.f32 0.03125, %v942_v20  ;;  %v1028_v50 = vsel %vm69_vm0, %v988_v10, 0.0  ;;  %v989_v7 = vmul.f32 %v2799_v4, %v2799_v4  ;;  %2077 = vmatprep.subr.bf16.mxu1 %v2120_v31 }
 0x428   :  { %1029 = vadd.xlane.f32.xlu0 %v1028_v50 }
 0x429   :  { %v2811_v3 = vsub.f32 %v2715_v32, %v959_v17  ;;  %v1031_v23 = vsel %vm69_vm0, %v989_v7, 0.0  ;;  %v990_v24 = vmul.f32 %v2805_v12, %v2805_v12  ;;  %v2114_v32 = vld [vmem:[%s3287_s3 + $0x8] sm:$0xff]  }
 0x42a   :  { %1032 = vadd.xlane.f32.xlu1 %v1031_v23  ;;  %2049 = vmatprep.subr.bf16.mxu0 %v2114_v32 }
 0x42b   :  { %v1034_v52 = vsel %vm69_vm0, %v990_v24, 0.0  ;;  %v991_v33 = vmul.f32 %v2811_v3, %v2811_v3  ;;  %2050 = vmatpush3.bf16.msra.mxu0 %v2114_v32  ;;  %2078 = vmatpush3.bf16.msra.mxu1 %v2120_v31 }
 0x42c   :  { %1035 = vadd.xlane.f32.xlu0 %v1034_v52 }
 0x42d   :  { %v1037_v8 = vsel %vm69_vm0, %v991_v33, 0.0 }
 0x42e   :  { %1038 = vadd.xlane.f32.xlu1 %v1037_v8 }
 0x49c   :  { %v994_v51 = vpop.xlane.xlu0 %993 }
 0x49d   :  { %v1040_v34 = vmul.f32 0.03125, %v994_v51 }
 0x49e   :  { %v997_v9 = vpop.xlane.xlu1 %996 }
 0x49f   :  { %v1056_v56 = vadd.f32 1e-05, %v1040_v34  ;;  %v1041_v46 = vmul.f32 0.03125, %v997_v9 }
 0x4a0   :  { %v1000_v0 = vpop.xlane.xlu0 %999 }
 0x4a1   :  { %2187 = vrsqrt.f32 %v1056_v56  ;;  %v1057_v15 = vadd.f32 1e-05, %v1041_v46  ;;  %v1042_v41 = vmul.f32 0.03125, %v1000_v0 }
 0x4a2   :  { %v1003_v55 = vpop.xlane.xlu1 %1002 }
 0x4a3   :  { %2189 = vrsqrt.f32 %v1057_v15  ;;  %v1058_v62 = vadd.f32 1e-05, %v1042_v41  ;;  %v1043_v1 = vmul.f32 0.03125, %v1003_v55 }
 0x4a5   :  { %2191 = vrsqrt.f32 %v1058_v62  ;;  %v1059_v16 = vadd.f32 1e-05, %v1043_v1  ;;  %v1006_v39 = vpop.xlane.xlu0 %1005 }
 0x4a6   :  { %v1044_v47 = vmul.f32 0.03125, %v1006_v39 }
 0x4a7   :  { %2193 = vrsqrt.f32 %v1059_v16  ;;  %v1009_v27 = vpop.xlane.xlu1 %1008 }
 0x4a8   :  { %v1060_v53 = vadd.f32 1e-05, %v1044_v47  ;;  %v1045_v2 = vmul.f32 0.03125, %v1009_v27 }
 0x4a9   :  { %v1012_v57 = vpop.xlane.xlu0 %1011 }
 0x4aa   :  { %2195 = vrsqrt.f32 %v1060_v53  ;;  %v1061_v58 = vadd.f32 1e-05, %v1045_v2  ;;  %v1046_v5 = vmul.f32 0.03125, %v1012_v57 }
 0x4ab   :  { %v2188_v36 = vpop.eup %2187  ;;  %v1015_v59 = vpop.xlane.xlu1 %1014 }
 0x4ac   :  { %v1088_v22 = vmul.f32 %v2188_v36, %v2725_v26  ;;  %2197 = vrsqrt.f32 %v1061_v58  ;;  %v1062_v38 = vadd.f32 1e-05, %v1046_v5  ;;  %v1047_v37 = vmul.f32 0.03125, %v1015_v59  ;;  %v2852_v26 = vld [vmem:[%s3285_s5 + $0x4] ss:$0 sm:$0xff] }
 0x4ad   :  { %v2190_v35 = vpop.eup %2189  ;;  %v1018_v63 = vpop.xlane.xlu0 %1017 }
 0x4ae   :  { %v1089_v48 = vmul.f32 %v2190_v35, %v2728_v6  ;;  %2199 = vrsqrt.f32 %v1062_v38  ;;  %v1063_v61 = vadd.f32 1e-05, %v1047_v37  ;;  %v1048_v40 = vmul.f32 0.03125, %v1018_v63 }
 0x4af   :  { %v2192_v10 = vpop.eup %2191  ;;  %v1021_v20 = vpop.xlane.xlu1 %1020  ;;  %v1108_v17 = vmul.f32 %v2845_v25, %v1088_v22 }
 0x4b0   :  { %v1090_v50 = vmul.f32 %v2192_v10, %v2733_v45  ;;  %2201 = vrsqrt.f32 %v1063_v61  ;;  %v1064_v7 = vadd.f32 1e-05, %v1048_v40  ;;  %v1049_v23 = vmul.f32 0.03125, %v1021_v20 }
 0x4b1   :  { %v2194_v24 = vpop.eup %2193  ;;  %v1024_v52 = vpop.xlane.xlu0 %1023  ;;  %v1109_v6 = vmul.f32 %v2845_v25, %v1089_v48  ;;  %v2859_v54 = vadd.f32 %v2852_v26, %v1108_v17 }
 0x4b2   :  { %v1110_v33 = vmul.f32 %v2845_v25, %v1090_v50  ;;  %v1091_v8 = vmul.f32 %v2194_v24, %v2739_v18  ;;  %2203 = vrsqrt.f32 %v1064_v7  ;;  %v1065_v32 = vadd.f32 1e-05, %v1049_v23 }
 0x4b3   :  { %v1050_v44 = vmul.f32 0.03125, %v1024_v52  ;;  %v1027_v13 = vpop.xlane.xlu1 %1026  ;;  %v2862_v45 = vadd.f32 %v2852_v26, %v1109_v6 }
 0x4b4   :  { %v2196_v29 = vpop.eup %2195  ;;  %v1111_v30 = vmul.f32 %v2845_v25, %v1091_v8  ;;  %2205 = vrsqrt.f32 %v1065_v32  ;;  %v1051_v31 = vmul.f32 0.03125, %v1027_v13  ;;  %v2869_v46 = vadd.f32 %v2852_v26, %v1110_v33 }
 0x4b5   :  { %v1092_v51 = vmul.f32 %v2196_v29, %v2748_v28  ;;  %v1066_v34 = vadd.f32 1e-05, %v1050_v44  ;;  %v1030_v9 = vpop.xlane.xlu0 %1029  ;;  %v1144_v18 = vpack.c.bf16 %v2862_v45, %v2859_v54 }
 0x4b6   :  { %v2198_v56 = vpop.eup %2197  ;;  %v2872_v0 = vadd.f32 %v2852_v26, %v1111_v30  ;;  %v1067_v15 = vadd.f32 1e-05, %v1051_v31  ;;  %v1052_v41 = vmul.f32 0.03125, %v1030_v9 }
 0x4b7   :  { %v1093_v55 = vmul.f32 %v2198_v56, %v2752_v49  ;;  %2207 = vrsqrt.f32 %v1066_v34  ;;  %2051 = vmatprep.mubr.msk.bf16.mxu0 %vm69_vm0, %v1144_v18  ;;  %v1033_v28 = vpop.xlane.xlu1 %1032  ;;  %v1112_v62 = vmul.f32 %v2845_v25, %v1092_v51 }
 0x4b8   :  { %v2200_v1 = vpop.eup %2199  ;;  %2209 = vrsqrt.f32 %v1067_v15  ;;  %v1068_v16 = vadd.f32 1e-05, %v1052_v41  ;;  %v1053_v39 = vmul.f32 0.03125, %v1033_v28  ;;  %v1145_v47 = vpack.c.bf16 %v2872_v0, %v2869_v46 }
 0x4b9   :  { %v1094_v27 = vmul.f32 %v2200_v1, %v2757_v14  ;;  %v1036_v53 = vpop.xlane.xlu0 %1035  ;;  %v1113_v2 = vmul.f32 %v2845_v25, %v1093_v55  ;;  %v2884_v59 = vadd.f32 %v2852_v26, %v1112_v62 }
 0x4ba   :  { %v2202_v57 = vpop.eup %2201  ;;  %2211 = vrsqrt.f32 %v1068_v16  ;;  %v1069_v49 = vadd.f32 1e-05, %v1053_v39  ;;  %v1054_v58 = vmul.f32 0.03125, %v1036_v53  ;;  %2052 = vmatmul.mubr.msk.bf16.vlgmr.msra.gmra.mrb[48].mxu0 %vm69_vm0, %v1145_v47  ;;  %v2121_v16 = vld [vmem:[%s3288_s4 + $0x30] sm:$0xff]  }
 0x4bb   :  { %v1095_v5 = vmul.f32 %v2202_v57, %v2763_v43  ;;  %v1039_v36 = vpop.xlane.xlu1 %1038  ;;  %v2887_v22 = vadd.f32 %v2852_v26, %v1113_v2  ;;  %v1114_v14 = vmul.f32 %v2845_v25, %v1094_v27  ;;  %2079 = vmatprep.subr.bf16.mxu1 %v2121_v16 }
 0x4bc   :  { %v2204_v38 = vpop.eup %2203  ;;  %2213 = vrsqrt.f32 %v1069_v49  ;;  %v1070_v37 = vadd.f32 1e-05, %v1054_v58  ;;  %v1055_v35 = vmul.f32 0.03125, %v1039_v36  ;;  %2080 = vmatpush3.bf16.msra.mxu1 %v2121_v16 }
 0x4bd   :  { %v1096_v63 = vmul.f32 %v2204_v38, %v2769_v11  ;;  %v1146_v48 = vpack.c.bf16 %v2887_v22, %v2884_v59  ;;  %v1115_v43 = vmul.f32 %v2845_v25, %v1095_v5  ;;  %v2897_v20 = vadd.f32 %v2852_v26, %v1114_v14 }
 0x4be   :  { %v2206_v61 = vpop.eup %2205  ;;  %2215 = vrsqrt.f32 %v1070_v37  ;;  %v1071_v40 = vadd.f32 1e-05, %v1055_v35 }
 0x4bf   :  { %v1097_v10 = vmul.f32 %v2206_v61, %v2775_v19  ;;  %2055 = vmatprep.mubr.msk.bf16.mxu0 %vm69_vm0, %v1146_v48  ;;  %v2900_v17 = vadd.f32 %v2852_v26, %v1115_v43  ;;  %v1116_v11 = vmul.f32 %v2845_v25, %v1096_v63 }
 0x4c0   :  { %2217 = vrsqrt.f32 %v1071_v40 }
 0x4c1   :  { %v2208_v50 = vpop.eup %2207  ;;  %v1147_v7 = vpack.c.bf16 %v2900_v17, %v2897_v20  ;;  %v1117_v23 = vmul.f32 %v2845_v25, %v1097_v10  ;;  %v2910_v6 = vadd.f32 %v2852_v26, %v1116_v11 }
 0x4c2   :  { %v2210_v24 = vpop.eup %2209  ;;  %v1098_v19 = vmul.f32 %v2208_v50, %v2781_v42 }
 0x4c3   :  { %v1099_v52 = vmul.f32 %v2210_v24, %v2787_v21  ;;  %2056 = vmatmul.mubr.msk.bf16.gmra.mrb[52].mxu0 %vm69_vm0, %v1147_v7  ;;  %v2913_v33 = vadd.f32 %v2852_v26, %v1117_v23 }
 0x4c4   :  { %v2212_v8 = vpop.eup %2211  ;;  %v1118_v32 = vmul.f32 %v2845_v25, %v1098_v19 }
 0x4c5   :  { %v1100_v44 = vmul.f32 %v2212_v8, %v2793_v60  ;;  %v1148_v13 = vpack.c.bf16 %v2913_v33, %v2910_v6  ;;  %v1119_v42 = vmul.f32 %v2845_v25, %v1099_v52 }
 0x4c6   :  { %v2214_v29 = vpop.eup %2213  ;;  %v2923_v30 = vadd.f32 %v2852_v26, %v1118_v32 }
 0x4c7   :  { %v1101_v21 = vmul.f32 %v2214_v29, %v2799_v4  ;;  %2059 = vmatprep.mubr.msk.bf16.mxu0 %vm69_vm0, %v1148_v13  ;;  %v2926_v31 = vadd.f32 %v2852_v26, %v1119_v42  ;;  %v1120_v51 = vmul.f32 %v2845_v25, %v1100_v44 }
 0x4c8   :  { %v2216_v34 = vpop.eup %2215 }
 0x4c9   :  { %v1102_v60 = vmul.f32 %v2216_v34, %v2805_v12  ;;  %v1149_v9 = vpack.c.bf16 %v2926_v31, %v2923_v30  ;;  %v1121_v18 = vmul.f32 %v2845_v25, %v1101_v21  ;;  %v2936_v15 = vadd.f32 %v2852_v26, %v1120_v51 }
 0x4ca   :  { %v2218_v56 = vpop.eup %2217 }
 0x4cb   :  { %v1103_v4 = vmul.f32 %v2218_v56, %v2811_v3  ;;  %2060 = vmatmul.mubr.msk.bf16.gmra.mrb[56].mxu0 %vm69_vm0, %v1149_v9  ;;  %v2939_v41 = vadd.f32 %v2852_v26, %v1121_v18  ;;  %v1122_v55 = vmul.f32 %v2845_v25, %v1102_v60 }
 0x4cd   :  { %v1150_v12 = vpack.c.bf16 %v2939_v41, %v2936_v15  ;;  %v1123_v28 = vmul.f32 %v2845_v25, %v1103_v4  ;;  %v2947_v62 = vadd.f32 %v2852_v26, %v1122_v55  ;;  %v2122_v25 = vld [vmem:[%s3288_s4 + $0x38] sm:$0xff]  }
 0x4ce   :  { %2081 = vmatprep.subr.bf16.mxu1 %v2122_v25 }
 0x4cf   :  { %2063 = vmatprep.mubr.msk.bf16.mxu0 %vm69_vm0, %v1150_v12  ;;  %v2950_v3 = vadd.f32 %v2852_v26, %v1123_v28  ;;  %2082 = vmatpush3.bf16.msra.mxu1 %v2122_v25  ;;  %v1813_v26 = vld [vmem:[%s3285_s5 + $0x5] ss:$0 sm:$0xff] }
 0x4d1   :  { %v1151_v1 = vpack.c.bf16 %v2950_v3, %v2947_v62 }
 0x4d3   :  { %2064 = vmatmul.mubr.msk.bf16.gmra.mrb[60].mxu0 %vm69_vm0, %v1151_v1 }
 0x58d   :  { %v2053_v39 = vpop.f32.mrb[48].mxu0 }
 0x58e   :  { %v1240_v47 = vadd.f32 %v2053_v39, %v1813_v26  ;;  %v1231_v27 = vpop.f32.mrb[49].mxu0 }
 0x58f   :  { %v1232_v53 = vadd.f32 %v1813_v26, %v1231_v27  ;;  %v2054_v2 = vpop.f32.mrb[50].mxu0 }
 0x590   :  { %v1243_v57 = vadd.f32 %v2054_v2, %v1813_v26  ;;  %v1234_v49 = vpop.f32.mrb[51].mxu0  ;;  %v1296_v5 = vmax.f32 %v1240_v47, 0.0 }
 0x591   :  { %v1235_v58 = vadd.f32 %v1813_v26, %v1234_v49  ;;  %v1294_v14 = vmax.f32 %v1232_v53, 0.0 }
 0x592   :  { %v1297_v36 = vmax.f32 %v1243_v57, 0.0 }
 0x593   :  { %v1295_v38 = vmax.f32 %v1235_v58, 0.0 }
 0x594   :  { %v1311_v37 = vpack.c.bf16 %v1297_v36, %v1296_v5  ;;  %v2967_v36 = vld [vmem:[%s3285_s5 + $0x6] ss:$0 sm:$0xff] }
 0x595   :  { %v1310_v35 = vpack.c.bf16 %v1295_v38, %v1294_v14 }
 0x596   :  { %v2057_v63 = vpop.f32.mrb[52].mxu0 }
 0x597   :  { %v1256_v48 = vadd.f32 %v2057_v63, %v1813_v26  ;;  %v1247_v43 = vpop.f32.mrb[53].mxu0  ;;  %2083 = vmatprep.mubr.bf16.mxu1 %v1310_v35 }
 0x598   :  { %v1248_v61 = vadd.f32 %v1813_v26, %v1247_v43  ;;  %v2058_v40 = vpop.f32.mrb[54].mxu0  ;;  %2084 = vmatmul.mubr.bf16.vlgmr.msra.gmra.mrb[32].mxu1 %v1311_v37 }
 0x599   :  { %v1259_v10 = vadd.f32 %v2058_v40, %v1813_v26  ;;  %v1250_v11 = vpop.f32.mrb[55].mxu0  ;;  %v1300_v7 = vmax.f32 %v1256_v48, 0.0 }
 0x59a   :  { %v1251_v50 = vadd.f32 %v1813_v26, %v1250_v11  ;;  %v1298_v24 = vmax.f32 %v1248_v61, 0.0 }
 0x59b   :  { %v1301_v23 = vmax.f32 %v1259_v10, 0.0 }
 0x59c   :  { %v1299_v19 = vmax.f32 %v1251_v50, 0.0 }
 0x59d   :  { %v1313_v52 = vpack.c.bf16 %v1301_v23, %v1300_v7 }
 0x59e   :  { %v1312_v8 = vpack.c.bf16 %v1299_v19, %v1298_v24  ;;  %v2061_v32 = vpop.f32.mrb[56].mxu0 }
 0x59f   :  { %v1272_v44 = vadd.f32 %v2061_v32, %v1813_v26  ;;  %v1263_v13 = vpop.f32.mrb[57].mxu0 }
 0x5a0   :  { %v1264_v42 = vadd.f32 %v1813_v26, %v1263_v13  ;;  %v2062_v29 = vpop.f32.mrb[58].mxu0  ;;  %2087 = vmatprep.mubr.bf16.mxu1 %v1312_v8 }
 0x5a1   :  { %v1275_v21 = vadd.f32 %v2062_v29, %v1813_v26  ;;  %v1266_v51 = vpop.f32.mrb[59].mxu0  ;;  %2088 = vmatmul.mubr.bf16.gmra.mrb[36].mxu1 %v1313_v52  ;;  %v1304_v60 = vmax.f32 %v1272_v44, 0.0 }
 0x5a2   :  { %v1267_v34 = vadd.f32 %v1813_v26, %v1266_v51  ;;  %v1302_v18 = vmax.f32 %v1264_v42, 0.0 }
 0x5a3   :  { %v1305_v9 = vmax.f32 %v1275_v21, 0.0 }
 0x5a4   :  { %v1303_v56 = vmax.f32 %v1267_v34, 0.0 }
 0x5a5   :  { %v1315_v4 = vpack.c.bf16 %v1305_v9, %v1304_v60 }
 0x5a6   :  { %v1314_v55 = vpack.c.bf16 %v1303_v56, %v1302_v18  ;;  %v2065_v12 = vpop.f32.mrb[60].mxu0 }
 0x5a7   :  { %v1288_v28 = vadd.f32 %v2065_v12, %v1813_v26  ;;  %v1279_v1 = vpop.f32.mrb[61].mxu0 }
 0x5a8   :  { %v1280_v16 = vadd.f32 %v1813_v26, %v1279_v1  ;;  %v2066_v25 = vpop.f32.mrb[62].mxu0  ;;  %2091 = vmatprep.mubr.bf16.mxu1 %v1314_v55 }
 0x5a9   :  { %v1291_v39 = vadd.f32 %v2066_v25, %v1813_v26  ;;  %v1282_v47 = vpop.f32.mrb[63].mxu0  ;;  %2092 = vmatmul.mubr.bf16.gmra.mrb[40].mxu1 %v1315_v4  ;;  %v1308_v53 = vmax.f32 %v1288_v28, 0.0 }
 0x5aa   :  { %v1283_v27 = vadd.f32 %v1813_v26, %v1282_v47  ;;  %v1306_v57 = vmax.f32 %v1280_v16, 0.0 }
 0x5ab   :  { %v1309_v2 = vmax.f32 %v1291_v39, 0.0 }
 0x5ac   :  { %v1307_v49 = vmax.f32 %v1283_v27, 0.0 }
 0x5ad   :  { %v1317_v58 = vpack.c.bf16 %v1309_v2, %v1308_v53 }
 0x5ae   :  { %v1316_v5 = vpack.c.bf16 %v1307_v49, %v1306_v57 }
 0x5b0   :  { %2095 = vmatprep.mubr.bf16.mxu1 %v1316_v5 }
 0x5b1   :  { %2096 = vmatmul.mubr.bf16.gmra.mrb[44].mxu1 %v1317_v58 }
 0x66b   :  { %v2085_v14 = vpop.f32.mrb[32].mxu1 }
 0x66c   :  { %v1430_v38 = vadd.f32 %v2085_v14, %v2967_v36  ;;  %v1421_v37 = vpop.f32.mrb[33].mxu1 }
 0x66d   :  { %v1422_v35 = vadd.f32 %v2967_v36, %v1421_v37  ;;  %v2086_v26 = vpop.f32.mrb[34].mxu1 }
 0x66e   :  { %v1433_v63 = vadd.f32 %v2086_v26, %v2967_v36  ;;  %v1424_v48 = vpop.f32.mrb[35].mxu1  ;;  %v2973_v43 = vadd.f32 %v1430_v38, %v2869_v46 }
 0x66f   :  { %v1425_v61 = vadd.f32 %v2967_v36, %v1424_v48  ;;  %v2982_v11 = vadd.f32 %v1422_v35, %v2859_v54 }
 0x670   :  { %v1508_v40 = vsel %vm69_vm0, %v2973_v43, 0.0  ;;  %v2979_v10 = vadd.f32 %v1433_v63, %v2872_v0 }
 0x671   :  { %1509 = vadd.xlane.f32.xlu0 %v1508_v40  ;;  %v2987_v7 = vadd.f32 %v1425_v61, %v2862_v45  ;;  %v1502_v23 = vsel %vm69_vm0, %v2982_v11, 0.0 }
 0x672   :  { %v1511_v50 = vsel %vm69_vm0, %v2979_v10, 0.0 }
 0x673   :  { %1512 = vadd.xlane.f32.xlu1 %v1511_v50  ;;  %v1505_v52 = vsel %vm69_vm0, %v2987_v7, 0.0 }
 0x674   :  { %v2089_v46 = vpop.f32.mrb[36].mxu1 }
 0x675   :  { %v1446_v24 = vadd.f32 %v2089_v46, %v2967_v36  ;;  %1503 = vadd.xlane.f32.xlu0 %v1502_v23  ;;  %v1437_v0 = vpop.f32.mrb[37].mxu1 }
 0x676   :  { %v1438_v19 = vadd.f32 %v2967_v36, %v1437_v0  ;;  %v2090_v54 = vpop.f32.mrb[38].mxu1 }
 0x677   :  { %v1449_v8 = vadd.f32 %v2090_v54, %v2967_v36  ;;  %1506 = vadd.xlane.f32.xlu1 %v1505_v52  ;;  %v1440_v45 = vpop.f32.mrb[39].mxu1  ;;  %v2997_v32 = vadd.f32 %v1446_v24, %v2897_v20 }
 0x678   :  { %v1441_v44 = vadd.f32 %v2967_v36, %v1440_v45  ;;  %v3006_v29 = vadd.f32 %v1438_v19, %v2884_v59 }
 0x679   :  { %v1520_v13 = vsel %vm69_vm0, %v2997_v32, 0.0  ;;  %v3003_v42 = vadd.f32 %v1449_v8, %v2900_v17 }
 0x67a   :  { %1521 = vadd.xlane.f32.xlu0 %v1520_v13  ;;  %v3011_v51 = vadd.f32 %v1441_v44, %v2887_v22  ;;  %v1514_v9 = vsel %vm69_vm0, %v3006_v29, 0.0 }
 0x67b   :  { %v1523_v21 = vsel %vm69_vm0, %v3003_v42, 0.0 }
 0x67c   :  { %1524 = vadd.xlane.f32.xlu1 %v1523_v21  ;;  %v2093_v20 = vpop.f32.mrb[40].mxu1  ;;  %v1517_v4 = vsel %vm69_vm0, %v3011_v51, 0.0 }
 0x67d   :  { %v1462_v34 = vadd.f32 %v2093_v20, %v2967_v36  ;;  %v1453_v60 = vpop.f32.mrb[41].mxu1 }
 0x67e   :  { %v1454_v17 = vadd.f32 %v2967_v36, %v1453_v60  ;;  %1515 = vadd.xlane.f32.xlu0 %v1514_v9  ;;  %v2094_v59 = vpop.f32.mrb[42].mxu1 }
 0x67f   :  { %v1465_v18 = vadd.f32 %v2094_v59, %v2967_v36  ;;  %v1456_v56 = vpop.f32.mrb[43].mxu1  ;;  %v3021_v22 = vadd.f32 %v1462_v34, %v2923_v30 }
 0x680   :  { %v1457_v55 = vadd.f32 %v2967_v36, %v1456_v56  ;;  %1518 = vadd.xlane.f32.xlu1 %v1517_v4  ;;  %v3030_v1 = vadd.f32 %v1454_v17, %v2910_v6 }
 0x681   :  { %v1532_v12 = vsel %vm69_vm0, %v3021_v22, 0.0  ;;  %v3027_v28 = vadd.f32 %v1465_v18, %v2926_v31 }
 0x682   :  { %1533 = vadd.xlane.f32.xlu0 %v1532_v12  ;;  %v3035_v25 = vadd.f32 %v1457_v55, %v2913_v33  ;;  %v1526_v47 = vsel %vm69_vm0, %v3030_v1, 0.0 }
 0x683   :  { %v1535_v16 = vsel %vm69_vm0, %v3027_v28, 0.0 }
 0x684   :  { %1536 = vadd.xlane.f32.xlu1 %v1535_v16  ;;  %v2097_v30 = vpop.f32.mrb[44].mxu1  ;;  %v1529_v2 = vsel %vm69_vm0, %v3035_v25, 0.0 }
 0x685   :  { %v1469_v39 = vpop.f32.mrb[45].mxu1  ;;  %v1478_v27 = vadd.f32 %v2097_v30, %v2967_v36 }
 0x686   :  { %v1470_v31 = vadd.f32 %v2967_v36, %v1469_v39  ;;  %1527 = vadd.xlane.f32.xlu0 %v1526_v47  ;;  %v2098_v6 = vpop.f32.mrb[46].mxu1 }
 0x687   :  { %v1472_v53 = vpop.f32.mrb[47].mxu1  ;;  %v1481_v57 = vadd.f32 %v2098_v6, %v2967_v36  ;;  %v3054_v14 = vadd.f32 %v1478_v27, %v2947_v62 }
 0x688   :  { %v1473_v33 = vadd.f32 %v2967_v36, %v1472_v53  ;;  %1530 = vadd.xlane.f32.xlu1 %v1529_v2  ;;  %v3046_v49 = vadd.f32 %v1470_v31, %v2936_v15 }
 0x689   :  { %v3059_v37 = vadd.f32 %v1481_v57, %v2950_v3  ;;  %v1544_v15 = vsel %vm69_vm0, %v3054_v14, 0.0 }
 0x68a   :  { %v1538_v58 = vsel %vm69_vm0, %v3046_v49, 0.0  ;;  %v3051_v5 = vadd.f32 %v1473_v33, %v2939_v41 }
 0x68b   :  { %1539 = vadd.xlane.f32.xlu0 %v1538_v58  ;;  %v1547_v36 = vsel %vm69_vm0, %v3059_v37, 0.0 }
 0x68c   :  { %v1541_v38 = vsel %vm69_vm0, %v3051_v5, 0.0 }
 0x68d   :  { %1542 = vadd.xlane.f32.xlu1 %v1541_v38 }
 0x68f   :  { %1545 = vadd.xlane.f32.xlu0 %v1544_v15 }
 0x691   :  { %1548 = vadd.xlane.f32.xlu1 %v1547_v36 }
 0x6fe   :  { %v1510_v41 = vpop.xlane.xlu0 %1509 }
 0x6ff   :  { %v1552_v35 = vmul.f32 0.03125, %v1510_v41 }
 0x700   :  { %v1513_v62 = vpop.xlane.xlu1 %1512 }
 0x701   :  { %v3066_v26 = vsub.f32 %v2973_v43, %v1552_v35  ;;  %v1553_v63 = vmul.f32 0.03125, %v1513_v62 }
 0x702   :  { %v1504_v48 = vpop.xlane.xlu0 %1503 }
 0x703   :  { %v3069_v3 = vsub.f32 %v2979_v10, %v1553_v63  ;;  %v1550_v61 = vmul.f32 0.03125, %v1504_v48  ;;  %v1584_v40 = vmul.f32 %v3066_v26, %v3066_v26 }
 0x704   :  { %v1507_v50 = vpop.xlane.xlu1 %1506 }
 0x705   :  { %v3074_v46 = vsub.f32 %v2982_v11, %v1550_v61  ;;  %v1551_v23 = vmul.f32 0.03125, %v1507_v50  ;;  %v1604_v24 = vsel %vm69_vm0, %v1584_v40, 0.0  ;;  %v1585_v43 = vmul.f32 %v3069_v3, %v3069_v3 }
 0x706   :  { %1605 = vadd.xlane.f32.xlu0 %v1604_v24 }
 0x707   :  { %v3080_v0 = vsub.f32 %v2987_v7, %v1551_v23  ;;  %v1522_v10 = vpop.xlane.xlu0 %1521  ;;  %v1607_v19 = vsel %vm69_vm0, %v1585_v43, 0.0  ;;  %v1582_v54 = vmul.f32 %v3074_v46, %v3074_v46 }
 0x708   :  { %v1556_v52 = vmul.f32 0.03125, %v1522_v10  ;;  %1608 = vadd.xlane.f32.xlu1 %v1607_v19 }
 0x709   :  { %v1525_v11 = vpop.xlane.xlu1 %1524  ;;  %v1598_v8 = vsel %vm69_vm0, %v1582_v54, 0.0  ;;  %v1583_v45 = vmul.f32 %v3080_v0, %v3080_v0 }
 0x70a   :  { %v3089_v44 = vsub.f32 %v2997_v32, %v1556_v52  ;;  %v1557_v13 = vmul.f32 0.03125, %v1525_v11  ;;  %1599 = vadd.xlane.f32.xlu0 %v1598_v8 }
 0x70b   :  { %v1516_v7 = vpop.xlane.xlu0 %1515  ;;  %v1601_v21 = vsel %vm69_vm0, %v1583_v45, 0.0 }
 0x70c   :  { %v3093_v20 = vsub.f32 %v3003_v42, %v1557_v13  ;;  %v1554_v34 = vmul.f32 0.03125, %v1516_v7  ;;  %1602 = vadd.xlane.f32.xlu1 %v1601_v21  ;;  %v1588_v60 = vmul.f32 %v3089_v44, %v3089_v44 }
 0x70d   :  { %v1519_v9 = vpop.xlane.xlu1 %1518 }
 0x70e   :  { %v3098_v17 = vsub.f32 %v3006_v29, %v1554_v34  ;;  %v1555_v59 = vmul.f32 0.03125, %v1519_v9  ;;  %v1616_v32 = vsel %vm69_vm0, %v1588_v60, 0.0  ;;  %v1589_v18 = vmul.f32 %v3093_v20, %v3093_v20 }
 0x70f   :  { %1617 = vadd.xlane.f32.xlu0 %v1616_v32  ;;  %v1534_v56 = vpop.xlane.xlu0 %1533 }
 0x710   :  { %v3104_v42 = vsub.f32 %v3011_v51, %v1555_v59  ;;  %v1560_v4 = vmul.f32 0.03125, %v1534_v56  ;;  %v1619_v55 = vsel %vm69_vm0, %v1589_v18, 0.0  ;;  %v1586_v12 = vmul.f32 %v3098_v17, %v3098_v17 }
 0x711   :  { %v1537_v16 = vpop.xlane.xlu1 %1536  ;;  %1620 = vadd.xlane.f32.xlu1 %v1619_v55 }
 0x712   :  { %v3110_v29 = vsub.f32 %v3021_v22, %v1560_v4  ;;  %v1561_v30 = vmul.f32 0.03125, %v1537_v16  ;;  %v1610_v39 = vsel %vm69_vm0, %v1586_v12, 0.0  ;;  %v1587_v47 = vmul.f32 %v3104_v42, %v3104_v42 }
 0x713   :  { %1611 = vadd.xlane.f32.xlu0 %v1610_v39  ;;  %v1528_v51 = vpop.xlane.xlu0 %1527 }
 0x714   :  { %v3116_v27 = vsub.f32 %v3027_v28, %v1561_v30  ;;  %v1558_v31 = vmul.f32 0.03125, %v1528_v51  ;;  %v1613_v6 = vsel %vm69_vm0, %v1587_v47, 0.0  ;;  %v1592_v53 = vmul.f32 %v3110_v29, %v3110_v29 }
 0x715   :  { %v1531_v2 = vpop.xlane.xlu1 %1530  ;;  %1614 = vadd.xlane.f32.xlu1 %v1613_v6  ;;  %v3164_v6 = vld [vmem:[%s3285_s5 + $0x7] ss:$0 sm:$0xff] }
 0x716   :  { %v3122_v22 = vsub.f32 %v3030_v1, %v1558_v31  ;;  %v1559_v57 = vmul.f32 0.03125, %v1531_v2  ;;  %v1628_v33 = vsel %vm69_vm0, %v1592_v53, 0.0  ;;  %v1593_v58 = vmul.f32 %v3116_v27, %v3116_v27 }
 0x717   :  { %1629 = vadd.xlane.f32.xlu0 %v1628_v33 }
 0x718   :  { %v3128_v28 = vsub.f32 %v3035_v25, %v1559_v57  ;;  %v1540_v38 = vpop.xlane.xlu0 %1539  ;;  %v1631_v15 = vsel %vm69_vm0, %v1593_v58, 0.0  ;;  %v1590_v36 = vmul.f32 %v3122_v22, %v3122_v22 }
 0x719   :  { %v1562_v41 = vmul.f32 0.03125, %v1540_v38  ;;  %1632 = vadd.xlane.f32.xlu1 %v1631_v15  ;;  %v3170_v38 = vld [vmem:[%s3285_s5 + $0x8] ss:$0 sm:$0xff] }
 0x71a   :  { %v1543_v1 = vpop.xlane.xlu1 %1542  ;;  %v1622_v35 = vsel %vm69_vm0, %v1590_v36, 0.0  ;;  %v1591_v62 = vmul.f32 %v3128_v28, %v3128_v28 }
 0x71b   :  { %v3137_v63 = vsub.f32 %v3046_v49, %v1562_v41  ;;  %v1563_v48 = vmul.f32 0.03125, %v1543_v1  ;;  %1623 = vadd.xlane.f32.xlu0 %v1622_v35 }
 0x71c   :  { %v1546_v25 = vpop.xlane.xlu0 %1545  ;;  %v1625_v61 = vsel %vm69_vm0, %v1591_v62, 0.0 }
 0x71d   :  { %v3141_v40 = vsub.f32 %v3051_v5, %v1563_v48  ;;  %v1564_v50 = vmul.f32 0.03125, %v1546_v25  ;;  %1626 = vadd.xlane.f32.xlu1 %v1625_v61  ;;  %v1594_v23 = vmul.f32 %v3137_v63, %v3137_v63 }
 0x71e   :  { %v1549_v24 = vpop.xlane.xlu1 %1548 }
 0x71f   :  { %v3146_v43 = vsub.f32 %v3054_v14, %v1564_v50  ;;  %v1565_v10 = vmul.f32 0.03125, %v1549_v24  ;;  %v1634_v49 = vsel %vm69_vm0, %v1594_v23, 0.0  ;;  %v1595_v19 = vmul.f32 %v3141_v40, %v3141_v40 }
 0x720   :  { %1635 = vadd.xlane.f32.xlu0 %v1634_v49 }
 0x721   :  { %v3152_v54 = vsub.f32 %v3059_v37, %v1565_v10  ;;  %v1637_v5 = vsel %vm69_vm0, %v1595_v19, 0.0  ;;  %v1596_v52 = vmul.f32 %v3146_v43, %v3146_v43 }
 0x722   :  { %1638 = vadd.xlane.f32.xlu1 %v1637_v5 }
 0x723   :  { %v1640_v11 = vsel %vm69_vm0, %v1596_v52, 0.0  ;;  %v1597_v14 = vmul.f32 %v3152_v54, %v3152_v54 }
 0x724   :  { %1641 = vadd.xlane.f32.xlu0 %v1640_v11 }
 0x725   :  { %v1643_v8 = vsel %vm69_vm0, %v1597_v14, 0.0 }
 0x726   :  { %1644 = vadd.xlane.f32.xlu1 %v1643_v8 }
 0x793   :  { %v1606_v45 = vpop.xlane.xlu0 %1605 }
 0x794   :  { %v1648_v13 = vmul.f32 0.03125, %v1606_v45 }
 0x795   :  { %v1609_v7 = vpop.xlane.xlu1 %1608 }
 0x796   :  { %v1664_v37 = vadd.f32 1e-05, %v1648_v13  ;;  %v1649_v21 = vmul.f32 0.03125, %v1609_v7 }
 0x797   :  { %v1600_v34 = vpop.xlane.xlu0 %1599 }
 0x798   :  { %2219 = vrsqrt.f32 %v1664_v37  ;;  %v1665_v60 = vadd.f32 1e-05, %v1649_v21  ;;  %v1646_v9 = vmul.f32 0.03125, %v1600_v34 }
 0x799   :  { %v1603_v59 = vpop.xlane.xlu1 %1602 }
 0x79a   :  { %2221 = vrsqrt.f32 %v1665_v60  ;;  %v1662_v32 = vadd.f32 1e-05, %v1646_v9  ;;  %v1647_v18 = vmul.f32 0.03125, %v1603_v59 }
 0x79c   :  { %2223 = vrsqrt.f32 %v1662_v32  ;;  %v1663_v56 = vadd.f32 1e-05, %v1647_v18  ;;  %v1618_v4 = vpop.xlane.xlu0 %1617 }
 0x79d   :  { %v1652_v55 = vmul.f32 0.03125, %v1618_v4 }
 0x79e   :  { %2225 = vrsqrt.f32 %v1663_v56  ;;  %v1621_v12 = vpop.xlane.xlu1 %1620 }
 0x79f   :  { %v1668_v16 = vadd.f32 1e-05, %v1652_v55  ;;  %v1653_v30 = vmul.f32 0.03125, %v1621_v12 }
 0x7a0   :  { %v1612_v39 = vpop.xlane.xlu0 %1611 }
 0x7a1   :  { %2227 = vrsqrt.f32 %v1668_v16  ;;  %v1669_v47 = vadd.f32 1e-05, %v1653_v30  ;;  %v1650_v51 = vmul.f32 0.03125, %v1612_v39 }
 0x7a2   :  { %v2220_v31 = vpop.eup %2219  ;;  %v1615_v53 = vpop.xlane.xlu1 %1614 }
 0x7a3   :  { %v1696_v2 = vmul.f32 %v2220_v31, %v3066_v26  ;;  %2229 = vrsqrt.f32 %v1669_v47  ;;  %v1666_v57 = vadd.f32 1e-05, %v1650_v51  ;;  %v1651_v33 = vmul.f32 0.03125, %v1615_v53 }
 0x7a4   :  { %v2222_v58 = vpop.eup %2221  ;;  %v1630_v15 = vpop.xlane.xlu0 %1629 }
 0x7a5   :  { %v1716_v36 = vmul.f32 %v3164_v6, %v1696_v2  ;;  %v1697_v41 = vmul.f32 %v2222_v58, %v3069_v3  ;;  %2231 = vrsqrt.f32 %v1666_v57  ;;  %v1667_v1 = vadd.f32 1e-05, %v1651_v33 }
 0x7a6   :  { %v2224_v35 = vpop.eup %2223  ;;  %v1656_v62 = vmul.f32 0.03125, %v1630_v15  ;;  %v1633_v48 = vpop.xlane.xlu1 %1632 }
 0x7a7   :  { %v1736_v26 = vadd.f32 %v3170_v38, %v1716_v36  ;;  %v1717_v25 = vmul.f32 %v3164_v6, %v1697_v41  ;;  %v1694_v61 = vmul.f32 %v2224_v35, %v3074_v46  ;;  %2233 = vrsqrt.f32 %v1667_v1 }
 0x7a8   :  { %v2226_v50 = vpop.eup %2225  ;;  %v1672_v23 = vadd.f32 1e-05, %v1656_v62  ;;  %v1657_v24 = vmul.f32 0.03125, %v1633_v48  ;;  %v1624_v10 = vpop.xlane.xlu0 %1623 }
 0x7a9   :  { %1752 = vst.msk [vmem:[%s3289_s6 + $0x10] sm:$0xff] %vm69_vm0, %v1736_v26  ;;  %v1737_v3 = vadd.f32 %v3170_v38, %v1717_v25  ;;  %v1714_v49 = vmul.f32 %v3164_v6, %v1694_v61  ;;  %v1695_v19 = vmul.f32 %v2226_v50, %v3080_v0  ;;  %v1654_v5 = vmul.f32 0.03125, %v1624_v10 }
 0x7aa   :  { %2235 = vrsqrt.f32 %v1672_v23  ;;  %v1673_v52 = vadd.f32 1e-05, %v1657_v24  ;;  %v1627_v46 = vpop.xlane.xlu1 %1626 }
 0x7ab   :  { %v2228_v11 = vpop.eup %2227  ;;  %1753 = vst.msk [vmem:[%s3289_s6 + $0x18] sm:$0xff] %vm69_vm0, %v1737_v3  ;;  %v1734_v14 = vadd.f32 %v3170_v38, %v1714_v49  ;;  %v1715_v8 = vmul.f32 %v3164_v6, %v1695_v19  ;;  %v1670_v45 = vadd.f32 1e-05, %v1654_v5  ;;  %v1655_v13 = vmul.f32 0.03125, %v1627_v46 }
 0x7ac   :  { %v1700_v7 = vmul.f32 %v2228_v11, %v3089_v44  ;;  %2237 = vrsqrt.f32 %v1673_v52 }
 0x7ad   :  { %v2230_v0 = vpop.eup %2229  ;;  %1750 = vst.msk [vmem:[%s3289_s6] sm:$0xff] %vm69_vm0, %v1734_v14  ;;  %v1735_v37 = vadd.f32 %v3170_v38, %v1715_v8  ;;  %2239 = vrsqrt.f32 %v1670_v45  ;;  %v1671_v21 = vadd.f32 1e-05, %v1655_v13  ;;  %v1636_v34 = vpop.xlane.xlu0 %1635 }
 0x7ae   :  { %v1720_v60 = vmul.f32 %v3164_v6, %v1700_v7  ;;  %v1701_v9 = vmul.f32 %v2230_v0, %v3093_v20  ;;  %v1658_v59 = vmul.f32 0.03125, %v1636_v34 }
 0x7af   :  { %v2232_v32 = vpop.eup %2231  ;;  %1751 = vst.msk [vmem:[%s3289_s6 + $0x8] sm:$0xff] %vm69_vm0, %v1735_v37  ;;  %2241 = vrsqrt.f32 %v1671_v21  ;;  %v1639_v44 = vpop.xlane.xlu1 %1638 }
 0x7b0   :  { %v1740_v18 = vadd.f32 %v3170_v38, %v1720_v60  ;;  %v1721_v56 = vmul.f32 %v3164_v6, %v1701_v9  ;;  %v1698_v4 = vmul.f32 %v2232_v32, %v3098_v17  ;;  %v1674_v55 = vadd.f32 1e-05, %v1658_v59 }
 0x7b1   :  { %v2234_v12 = vpop.eup %2233  ;;  %v1659_v16 = vmul.f32 0.03125, %v1639_v44  ;;  %v1642_v30 = vpop.xlane.xlu0 %1641 }
 0x7b2   :  { %1756 = vst.msk [vmem:[%s3289_s6 + $0x30] sm:$0xff] %vm69_vm0, %v1740_v18  ;;  %v1741_v20 = vadd.f32 %v3170_v38, %v1721_v56  ;;  %v1718_v39 = vmul.f32 %v3164_v6, %v1698_v4  ;;  %v1699_v47 = vmul.f32 %v2234_v12, %v3104_v42  ;;  %2243 = vrsqrt.f32 %v1674_v55 }
 0x7b3   :  { %v1675_v51 = vadd.f32 1e-05, %v1659_v16  ;;  %v1660_v31 = vmul.f32 0.03125, %v1642_v30  ;;  %v1645_v53 = vpop.xlane.xlu1 %1644 }
 0x7b4   :  { %v2236_v17 = vpop.eup %2235  ;;  %1757 = vst.msk [vmem:[%s3289_s6 + $0x38] sm:$0xff] %vm69_vm0, %v1741_v20  ;;  %v1738_v2 = vadd.f32 %v3170_v38, %v1718_v39  ;;  %v1719_v57 = vmul.f32 %v3164_v6, %v1699_v47  ;;  %v1661_v33 = vmul.f32 0.03125, %v1645_v53 }
 0x7b5   :  { %v1704_v58 = vmul.f32 %v2236_v17, %v3110_v29  ;;  %2245 = vrsqrt.f32 %v1675_v51  ;;  %v1676_v15 = vadd.f32 1e-05, %v1660_v31 }
 0x7b6   :  { %v2238_v42 = vpop.eup %2237  ;;  %1754 = vst.msk [vmem:[%s3289_s6 + $0x20] sm:$0xff] %vm69_vm0, %v1738_v2  ;;  %v1739_v36 = vadd.f32 %v3170_v38, %v1719_v57  ;;  %v1677_v41 = vadd.f32 1e-05, %v1661_v33 }
 0x7b7   :  { %v2240_v1 = vpop.eup %2239  ;;  %v1724_v35 = vmul.f32 %v3164_v6, %v1704_v58  ;;  %v1705_v62 = vmul.f32 %v2238_v42, %v3116_v27  ;;  %2247 = vrsqrt.f32 %v1676_v15 }
 0x7b8   :  { %1755 = vst.msk [vmem:[%s3289_s6 + $0x28] sm:$0xff] %vm69_vm0, %v1739_v36  ;;  %v1702_v29 = vmul.f32 %v2240_v1, %v3122_v22  ;;  %2249 = vrsqrt.f32 %v1677_v41 }
 0x7b9   :  { %v2242_v48 = vpop.eup %2241  ;;  %v1744_v26 = vadd.f32 %v3170_v38, %v1724_v35  ;;  %v1725_v25 = vmul.f32 %v3164_v6, %v1705_v62 }
 0x7ba   :  { %v1722_v61 = vmul.f32 %v3164_v6, %v1702_v29  ;;  %v1703_v50 = vmul.f32 %v2242_v48, %v3128_v28 }
 0x7bb   :  { %1760 = vst.msk [vmem:[%s3289_s6 + $0x50] sm:$0xff] %vm69_vm0, %v1744_v26  ;;  %v1745_v27 = vadd.f32 %v3170_v38, %v1725_v25 }
 0x7bc   :  { %v2244_v23 = vpop.eup %2243  ;;  %v1742_v22 = vadd.f32 %v3170_v38, %v1722_v61  ;;  %v1723_v24 = vmul.f32 %v3164_v6, %v1703_v50 }
 0x7bd   :  { %1761 = vst.msk [vmem:[%s3289_s6 + $0x58] sm:$0xff] %vm69_vm0, %v1745_v27  ;;  %v1706_v10 = vmul.f32 %v2244_v23, %v3137_v63 }
 0x7be   :  { %1758 = vst.msk [vmem:[%s3289_s6 + $0x40] sm:$0xff] %vm69_vm0, %v1742_v22  ;;  %v1743_v28 = vadd.f32 %v3170_v38, %v1723_v24 }
 0x7bf   :  { %v2246_v3 = vpop.eup %2245  ;;  %v1726_v49 = vmul.f32 %v3164_v6, %v1706_v10 }
 0x7c0   :  { %1759 = vst.msk [vmem:[%s3289_s6 + $0x48] sm:$0xff] %vm69_vm0, %v1743_v28  ;;  %v1707_v19 = vmul.f32 %v2246_v3, %v3141_v40 }
 0x7c1   :  { %v2248_v5 = vpop.eup %2247  ;;  %v1746_v63 = vadd.f32 %v3170_v38, %v1726_v49 }
 0x7c2   :  { %v2250_v52 = vpop.eup %2249  ;;  %v1727_v46 = vmul.f32 %v3164_v6, %v1707_v19  ;;  %v1708_v11 = vmul.f32 %v2248_v5, %v3146_v43 }
 0x7c3   :  { %1762 = vst.msk [vmem:[%s3289_s6 + $0x60] sm:$0xff] %vm69_vm0, %v1746_v63  ;;  %v1709_v14 = vmul.f32 %v2250_v52, %v3152_v54 }
 0x7c4   :  { %v1747_v8 = vadd.f32 %v3170_v38, %v1727_v46  ;;  %v1728_v45 = vmul.f32 %v3164_v6, %v1708_v11 }
 0x7c5   :  { %v1729_v40 = vmul.f32 %v3164_v6, %v1709_v14 }
 0x7c6   :  { %1763 = vst.msk [vmem:[%s3289_s6 + $0x68] sm:$0xff] %vm69_vm0, %v1747_v8  ;;  %v1748_v43 = vadd.f32 %v3170_v38, %v1728_v45 }
 0x7c7   :  { %v1749_v13 = vadd.f32 %v3170_v38, %v1729_v40 }
 0x7c8   :  { %1764 = vst.msk [vmem:[%s3289_s6 + $0x70] sm:$0xff] %vm69_vm0, %v1748_v43 }
 0x7c9   :  { %1765 = vst.msk [vmem:[%s3289_s6 + $0x78] sm:$0xff] %vm69_vm0, %v1749_v13 }

</bundles_post_ra>
